<compile_context>
chip_gen: v5e
topology: v5e:2x2
jax: 0.10.0
libtpu: 0.0.40
codegen_flags: <defaults>
</compile_context>

<pallas_src>
import functools

import jax
import jax.numpy as jnp
import numpy as np
from jax.experimental import pallas as pl
from jax.experimental.pallas import tpu as pltpu

LEAKY_RELU = 0.1


def _round_up(x, m):
    return ((x + m - 1) // m) * m


def _cdiv(a, b):
    return (a + b - 1) // b


def get_sinusoid_encoding_table(n_position, d_hid):
    """Standard FastSpeech sinusoid table, shape (n_position, d_hid).

    Row values are independent of n_position, so a table of any length agrees
    row-by-row with the torch module's buffer / recomputed long-sequence table.
    """
    position = jnp.arange(n_position, dtype=jnp.float32)[:, None]
    hid = jnp.arange(d_hid, dtype=jnp.float32)[None, :]
    angle = position / jnp.power(10000.0, 2.0 * jnp.floor(hid / 2.0) / d_hid)
    even = jnp.sin(angle)
    odd = jnp.cos(angle)
    is_even = (jnp.arange(d_hid) % 2 == 0)[None, :]
    return jnp.where(is_even, even, odd).astype(jnp.float32)


def _leaky(x):
    return jnp.where(x > 0, x, LEAKY_RELU * x)


def _vmem_capacity_bytes():
    try:
        cap = getattr(pltpu.get_tpu_info(), "vmem_capacity_bytes", None)
        if cap:
            return int(cap)
    except Exception:
        pass
    return 64 * 1024 * 1024          # v7x-safe fallback


def _choose_tiling(B, max_len, input_dim, hidden_dim, tm, group):
    """Pick (time-tile rows, batch-group size, vmem_limit_bytes) per generation."""
    H = hidden_dim
    cap = _vmem_capacity_bytes()      # 128 MiB on v5e/v6e, 64 MiB on v7x
    budget = int(cap * 0.6)           # compiler headroom below the cap

    # rough VMEM bytes per GEMM M-row: double-buffered f32 inputs (+ pos tile)
    # plus the f32 / bf16 intermediates of the five GEMMs.
    bytes_per_row = (4 * 2 * (input_dim + 2 * H)        # mels + srcs + pos, x2 bufs
                     + 4 * (H + 3 * 2 * H)              # f32 intermediates
                     + 2 * (input_dim + 5 * H))         # bf16 casts
    weight_bytes = 4 * (input_dim * H + H * H + 2 * H * 2 * H + 2 * (2 * H) ** 2)

    if tm is None:
        tm = min(1024, _round_up(max_len, 16))
        while tm > 16 and tm * bytes_per_row + weight_bytes > budget:
            tm = max(16, _round_up(tm // 2, 16))
    tm = max(16, _round_up(tm, 16))   # 16 sublanes: clean bf16 row packing

    if group is None:
        group = 1
        target_m = 1024               # MXU M-dwell target per weight residency
        for cand in range(min(B, max(1, target_m // tm)), 1, -1):
            if B % cand == 0 and cand * tm * bytes_per_row + weight_bytes <= budget:
                group = cand
                break
    assert B % group == 0, "batch-group size must divide the batch"

    vmem_limit = min(int(cap * 0.75), 120 * 1024 * 1024)
    return tm, group, vmem_limit


def _phoneme_disc_kernel(len_ref, mels_ref, srcs_ref, pos_ref,
                         w1, b1, w2, b2, w3a, w3b, b3, w4, b4, w5, b5,
                         w6r, b6, out_ref, num_acc, den_acc,
                         *, tm, group, t_src, max_len):
    g = pl.program_id(0)              # batch-group index ("parallel")
    k = pl.program_id(1)              # time-tile index (reduction, "arbitrary")
    G = group
    Din = mels_ref.shape[-1]
    H = srcs_ref.shape[-1]
    bf = jnp.bfloat16
    f32 = jnp.float32

    @pl.when(k == 0)
    def _():
        num_acc[...] = jnp.zeros_like(num_acc)
        den_acc[...] = jnp.zeros_like(den_acc)

    # Absolute time index of every row in this tile (same for each batch row).
    t_idx = k * tm + jax.lax.broadcasted_iota(jnp.int32, (tm, 1), 0)     # (tm,1)
    t_flat = t_idx if G == 1 else jnp.concatenate([t_idx] * G, axis=0)   # (G*tm,1)
    in_mel = t_flat < max_len         # rows past the array are undefined DMA fill
    in_src = t_flat < t_src           # torch zero-pads srcs up to the mel length

    # Fold the batch group into the GEMM M dim (tm % 16 == 0 -> free merge),
    # mask ragged / undefined tails, add positional encoding, cast for the MXU.
    m2 = jnp.where(in_mel, mels_ref[...].reshape(G * tm, Din), 0.0).astype(bf)
    pos = pos_ref[...] if G == 1 else jnp.concatenate([pos_ref[...]] * G, axis=0)
    s2 = (jnp.where(in_src, srcs_ref[...].reshape(G * tm, H), 0.0) + pos).astype(bf)

    # mel_prenet: Linear -> LeakyReLU -> Linear -> LeakyReLU  (bf16 MXU, f32 acc)
    h = _leaky(jnp.dot(m2, w1[...], preferred_element_type=f32) + b1[...])
    h = _leaky(jnp.dot(h.astype(bf), w2[...], preferred_element_type=f32) + b2[...])

    # fcs layer 1 on concat(h, s):  cat(h, s) @ W3 == h @ W3[:H] + s @ W3[H:]
    x = _leaky(jnp.dot(h.astype(bf), w3a[...], preferred_element_type=f32)
               + jnp.dot(s2, w3b[...], preferred_element_type=f32) + b3[...])
    x = _leaky(jnp.dot(x.astype(bf), w4[...], preferred_element_type=f32) + b4[...])
    x = _leaky(jnp.dot(x.astype(bf), w5[...], preferred_element_type=f32) + b5[...])
    # x: (G*tm, 2H) f32

    # Per-batch masked row-sums; the (2H -> 1) head is deferred to the epilogue.
    for i in range(G):                                    # G is a small static int
        valid_i = t_idx < len_ref[g * G + i]              # (tm,1) bool (prefix mask)
        xi = x[i * tm:(i + 1) * tm, :]                    # static aligned slice
        num_acc[i:i + 1, :] += jnp.sum(jnp.where(valid_i, xi, 0.0),
                                       axis=0, keepdims=True)
        den_acc[i:i + 1, :] += jnp.sum(valid_i.astype(f32), axis=0, keepdims=True)

    @pl.when(k == pl.num_programs(1) - 1)
    def _():
        # reduce-then-dot head:
        #   sum_t valid*(x_t.w6 + b6) == (sum_t valid*x_t).w6 + b6*nvalid
        for i in range(G):
            ni = num_acc[i:i + 1, :]                                    # (1, 2H)
            di = den_acc[i:i + 1, :]                                    # (1, 1)
            ti = jnp.sum(ni * w6r[...], axis=1, keepdims=True) + b6[...] * di
            # NOTE: a zero-length utterance gives 0/0 -> NaN, matching torch.
            out_ref[i] = (ti / di).astype(out_ref.dtype)


def phoneme_discriminator(mels, srcs, mask, params, pos_enc, max_seq_len,
                          hidden_dim, tm=None, group=None):
    """Pallas implementation of PhonemeDiscriminator.forward.

    mels: (B, T, input_dim) f32, srcs: (B, T_src, hidden_dim) f32,
    mask: (B, T) bool with True = padded frame.  Returns (B,) f32.
    """
    B, max_len, Din = mels.shape
    T_src = srcs.shape[1]
    H = hidden_dim
    bf = jnp.bfloat16
    f32 = jnp.float32

    # Per-batch valid lengths, scalar-prefetched into SMEM.
    # TODO(synk): assumes the standard contiguous prefix padding mask; an
    # arbitrary mask would have to be streamed into the kernel per time tile.
    lengths = jnp.sum(jnp.logical_not(mask).astype(jnp.int32), axis=1)

    tm, group, vmem_limit = _choose_tiling(B, max_len, Din, H, tm, group)
    nT = _cdiv(max_len, tm)
    T_pad = nT * tm

    # Positional table covering every time tile; row values equal the torch
    # buffer (`pos_enc`) and the recomputed long-sequence table, so one table
    # serves both torch branches.  Tiny: (T_pad, H), no batch dimension.
    pos = get_sinusoid_encoding_table(T_pad, H)

    # Split the first fcs weight so the kernel avoids a lane-dim concat.
    w3 = params["w3"]
    w3a, w3b = w3[:H], w3[H:]

    weights = (
        params["w1"].astype(bf), params["b1"].astype(f32),
        params["w2"].astype(bf), params["b2"].astype(f32),
        w3a.astype(bf), w3b.astype(bf), params["b3"].astype(f32),
        params["w4"].astype(bf), params["b4"].astype(f32),
        params["w5"].astype(bf), params["b5"].astype(f32),
        params["w6"].T.astype(f32),     # (1, 2H) row, applied on the VPU
        params["b6"].astype(f32),       # (1, 1)
    )

    # Clamp the srcs block index so no block is fully out of range when
    # T_src < max_len; rows at t >= T_src are zeroed in-kernel.
    n_src_blocks = max(1, _cdiv(T_src, tm))

    in_specs = [
        pl.BlockSpec((group, tm, Din), lambda g, k, L: (g, k, 0)),
        pl.BlockSpec((group, tm, H),
                     lambda g, k, L: (g, jnp.minimum(k, n_src_blocks - 1), 0)),
        pl.BlockSpec((tm, H), lambda g, k, L: (k, 0)),
    ] + [pl.BlockSpec(w.shape, lambda g, k, L: (0, 0)) for w in weights]

    kernel = functools.partial(_phoneme_disc_kernel, tm=tm, group=group,
                               t_src=T_src, max_len=max_len)

    # TODO(synk): when B // group == 1 on v7x, additionally split the time axis
    # across the two TensorCores (per-core partial sums combined in JAX).
    out = pl.pallas_call(
        kernel,
        out_shape=jax.ShapeDtypeStruct((B, 1, 1), jnp.float32),
        grid_spec=pltpu.PrefetchScalarGridSpec(
            num_scalar_prefetch=1,
            grid=(B // group, nT),          # reduction (time) axis innermost
            in_specs=in_specs,
            out_specs=pl.BlockSpec((group, 1, 1), lambda g, k, L: (g, 0, 0)),
            scratch_shapes=[pltpu.VMEM((group, 2 * H), jnp.float32),
                            pltpu.VMEM((group, 1), jnp.float32)],
        ),
        compiler_params=pltpu.CompilerParams(
            dimension_semantics=("parallel", "arbitrary"),
            vmem_limit_bytes=vmem_limit),
    )(lengths, mels.astype(f32), srcs.astype(f32), pos, *weights)
    return out[:, 0, 0]


def init_params(key, input_dim, hidden_dim):
    """Deterministic synthetic parameters (spectral_norm is a training-time
    weight reparameterization; forward-equivalent plain Linear weights are used)."""
    H = hidden_dim
    shapes = {
        "w1": (input_dim, H), "b1": (1, H),
        "w2": (H, H), "b2": (1, H),
        "w3": (2 * H, 2 * H), "b3": (1, 2 * H),
        "w4": (2 * H, 2 * H), "b4": (1, 2 * H),
        "w5": (2 * H, 2 * H), "b5": (1, 2 * H),
        "w6": (2 * H, 1), "b6": (1, 1),
    }
    params = {}
    keys = jax.random.split(key, len(shapes))
    for (name, shp), k in zip(shapes.items(), keys):
        fan_in = shp[0] if name.startswith("w") else shp[1]
        params[name] = (jax.random.normal(k, shp, jnp.float32)
                        / jnp.sqrt(jnp.float32(fan_in)))
    return params


def reference_forward(mels, srcs, mask, params, pos_enc, max_seq_len, hidden_dim):
    """Pure-JAX reference mirroring the torch forward (matmul inputs quantized to
    bf16 with f32 accumulation, matching the kernel's MXU math)."""
    B, max_len, _ = mels.shape
    H = hidden_dim
    bf = jnp.bfloat16

    def lin(x, w, b):
        return jnp.dot(x.astype(bf), w.astype(bf),
                       preferred_element_type=jnp.float32) + b

    h = _leaky(lin(mels, params["w1"], params["b1"]))
    h = _leaky(lin(h, params["w2"], params["b2"]))

    if srcs.shape[1] > max_seq_len:
        pos = get_sinusoid_encoding_table(srcs.shape[1], H)
        s = srcs + pos[None]
    else:
        pos = pos_enc[:max_len]
        s = jnp.pad(srcs, ((0, 0), (0, max_len - srcs.shape[1]), (0, 0))) + pos[None]

    x = jnp.concatenate([h, s], axis=-1)
    x = _leaky(lin(x, params["w3"], params["b3"]))
    x = _leaky(lin(x, params["w4"], params["b4"]))
    x = _leaky(lin(x, params["w5"], params["b5"]))
    t = (x @ params["w6"] + params["b6"])[..., 0]    # final head stays f32 (as kernel)
    valid = (~mask).astype(jnp.float32)
    return jnp.sum(t * valid, axis=1) / jnp.sum(valid, axis=1)


if __name__ == "__main__":
    B, T, T_src = 2, 24, 16
    input_dim, hidden_dim, max_seq_len = 16, 32, 32

    key = jax.random.PRNGKey(0)
    k_p, k_mel, k_src = jax.random.split(key, 3)

    params = init_params(k_p, input_dim, hidden_dim)
    pos_enc = get_sinusoid_encoding_table(max_seq_len + 1, hidden_dim)

    mels = jax.random.normal(k_mel, (B, T, input_dim), jnp.float32)
    srcs = jax.random.normal(k_src, (B, T_src, hidden_dim), jnp.float32)
    lengths = jnp.array([10, 20], dtype=jnp.int32)
    mask = jnp.arange(T)[None, :] >= lengths[:, None]   # True = padded (prefix mask)

    # tm=16, group=2 exercises batch folding, multi-tile accumulation, the
    # partial (undefined-tail) mel block and the clamped srcs block.
    out = phoneme_discriminator(mels, srcs, mask, params, pos_enc,
                                max_seq_len, hidden_dim, tm=16, group=2)
    out = jax.block_until_ready(out)

    ref = reference_forward(mels, srcs, mask, params, pos_enc,
                            max_seq_len, hidden_dim)
    ref = jax.block_until_ready(ref)

    np.testing.assert_allclose(np.asarray(out), np.asarray(ref),
                               rtol=1e-3, atol=1e-3)
    print("KERNEL_OK")
</pallas_src>

<mosaic_0001>
module attributes {stable_mosaic.version = 11 : i64} {
  func.func @_phoneme_disc_kernel(%arg0: i32, %arg1: i32, %arg2: memref<2xi32, #tpu.memory_space<smem>>, %arg3: memref<2x16x16xf32, #tpu.memory_space<vmem>>, %arg4: memref<2x16x32xf32, #tpu.memory_space<vmem>>, %arg5: memref<16x32xf32, #tpu.memory_space<vmem>>, %arg6: memref<16x32xbf16, #tpu.memory_space<vmem>>, %arg7: memref<1x32xf32, #tpu.memory_space<vmem>>, %arg8: memref<32x32xbf16, #tpu.memory_space<vmem>>, %arg9: memref<1x32xf32, #tpu.memory_space<vmem>>, %arg10: memref<32x64xbf16, #tpu.memory_space<vmem>>, %arg11: memref<32x64xbf16, #tpu.memory_space<vmem>>, %arg12: memref<1x64xf32, #tpu.memory_space<vmem>>, %arg13: memref<64x64xbf16, #tpu.memory_space<vmem>>, %arg14: memref<1x64xf32, #tpu.memory_space<vmem>>, %arg15: memref<64x64xbf16, #tpu.memory_space<vmem>>, %arg16: memref<1x64xf32, #tpu.memory_space<vmem>>, %arg17: memref<1x64xf32, #tpu.memory_space<vmem>>, %arg18: memref<1x1xf32, #tpu.memory_space<vmem>>, %arg19: memref<2x1x1xf32, #tpu.memory_space<vmem>>, %arg20: memref<2x64xf32, #tpu.memory_space<vmem>>, %arg21: memref<2x1xf32, #tpu.memory_space<vmem>>) attributes {dimension_semantics = [#tpu.dimension_semantics<parallel>, #tpu.dimension_semantics<arbitrary>], iteration_bounds = array<i64: 1, 2>, scalar_prefetch = 1 : i64, scratch_operands = 2 : i64, tpu.core_type = #tpu.core_type<tc>, window_params = [{transform_indices = @transform_0, window_bounds = array<i64: 2, 16, 16>}, {transform_indices = @transform_1, window_bounds = array<i64: 2, 16, 32>}, {transform_indices = @transform_2, window_bounds = array<i64: 16, 32>}, {pipeline_mode = #tpu.pipeline_mode<synchronous>, transform_indices = @transform_3, window_bounds = array<i64: 16, 32>}, {pipeline_mode = #tpu.pipeline_mode<synchronous>, transform_indices = @transform_4, window_bounds = array<i64: 1, 32>}, {pipeline_mode = #tpu.pipeline_mode<synchronous>, transform_indices = @transform_5, window_bounds = array<i64: 32, 32>}, {pipeline_mode = #tpu.pipeline_mode<synchronous>, transform_indices = @transform_6, window_bounds = array<i64: 1, 32>}, {pipeline_mode = #tpu.pipeline_mode<synchronous>, transform_indices = @transform_7, window_bounds = array<i64: 32, 64>}, {pipeline_mode = #tpu.pipeline_mode<synchronous>, transform_indices = @transform_8, window_bounds = array<i64: 32, 64>}, {pipeline_mode = #tpu.pipeline_mode<synchronous>, transform_indices = @transform_9, window_bounds = array<i64: 1, 64>}, {pipeline_mode = #tpu.pipeline_mode<synchronous>, transform_indices = @transform_10, window_bounds = array<i64: 64, 64>}, {pipeline_mode = #tpu.pipeline_mode<synchronous>, transform_indices = @transform_11, window_bounds = array<i64: 1, 64>}, {pipeline_mode = #tpu.pipeline_mode<synchronous>, transform_indices = @transform_12, window_bounds = array<i64: 64, 64>}, {pipeline_mode = #tpu.pipeline_mode<synchronous>, transform_indices = @transform_13, window_bounds = array<i64: 1, 64>}, {pipeline_mode = #tpu.pipeline_mode<synchronous>, transform_indices = @transform_14, window_bounds = array<i64: 1, 64>}, {pipeline_mode = #tpu.pipeline_mode<synchronous>, transform_indices = @transform_15, window_bounds = array<i64: 1, 1>}, {transform_indices = @transform_16, window_bounds = array<i64: 2, 1, 1>}]} {
    %c0_i32 = arith.constant 0 : i32
    %0 = arith.cmpi eq, %arg1, %c0_i32 : i32
    %1 = arith.extui %0 : i1 to i32
    %c0_i32_0 = arith.constant 0 : i32
    %2 = arith.cmpi ne, %1, %c0_i32_0 : i32
    scf.if %2 {
      %cst_73 = arith.constant 0.000000e+00 : f32
      %135 = vector.broadcast %cst_73 : f32 to vector<2x64xf32>
      %c0_74 = arith.constant 0 : index
      %c0_75 = arith.constant 0 : index
      %136 = vector.load %arg20[%c0_74, %c0_75] : memref<2x64xf32, #tpu.memory_space<vmem>>, vector<2x64xf32>
      tpu.vector_store %arg20[%c0_74, %c0_75], %135 {strides = array<i32>} : memref<2x64xf32, #tpu.memory_space<vmem>>, vector<2x64xf32>,
      %cst_76 = arith.constant 0.000000e+00 : f32
      %137 = vector.broadcast %cst_76 : f32 to vector<2x1xf32>
      %c0_77 = arith.constant 0 : index
      %c0_78 = arith.constant 0 : index
      %138 = vector.load %arg21[%c0_77, %c0_78] : memref<2x1xf32, #tpu.memory_space<vmem>>, vector<2x1xf32>
      tpu.vector_store %arg21[%c0_77, %c0_78], %137 {strides = array<i32>} : memref<2x1xf32, #tpu.memory_space<vmem>>, vector<2x1xf32>,
    } else {
    }
    %c16_i32 = arith.constant 16 : i32
    %3 = arith.muli %arg1, %c16_i32 : i32
    %4 = tpu.iota {dimensions = array<i32: 0>} : vector<16x1xi32>
    %5 = vector.broadcast %3 : i32 to vector<16x1xi32>
    %6 = arith.addi %5, %4 : vector<16x1xi32>
    %7 = tpu.concatenate %6, %6 in 0 : vector<16x1xi32>, vector<16x1xi32> -> vector<32x1xi32>
    %c24_i32 = arith.constant 24 : i32
    %8 = vector.broadcast %c24_i32 : i32 to vector<32x1xi32>
    %9 = arith.cmpi slt, %7, %8 : vector<32x1xi32>
    %c16_i32_1 = arith.constant 16 : i32
    %10 = vector.broadcast %c16_i32_1 : i32 to vector<32x1xi32>
    %11 = arith.cmpi slt, %7, %10 : vector<32x1xi32>
    %c0 = arith.constant 0 : index
    %c0_2 = arith.constant 0 : index
    %c0_3 = arith.constant 0 : index
    %12 = vector.load %arg3[%c0, %c0_2, %c0_3] : memref<2x16x16xf32, #tpu.memory_space<vmem>>, vector<2x16x16xf32>
    %13 = vector.shape_cast %12 : vector<2x16x16xf32> to vector<32x16xf32>
    %cst = arith.constant 0.000000e+00 : f32
    %14 = vector.shape_cast %9 : vector<32x1xi1> to vector<32x1xi1>
    %15 = vector.broadcast %14 : vector<32x1xi1> to vector<32x16xi1>
    %16 = vector.broadcast %cst : f32 to vector<32x16xf32>
    %17 = arith.select %15, %13, %16 : vector<32x16xi1>, vector<32x16xf32>
    %18 = arith.truncf %17 : vector<32x16xf32> to vector<32x16xbf16>
    %c0_4 = arith.constant 0 : index
    %c0_5 = arith.constant 0 : index
    %19 = vector.load %arg5[%c0_4, %c0_5] : memref<16x32xf32, #tpu.memory_space<vmem>>, vector<16x32xf32>
    %20 = tpu.concatenate %19, %19 in 0 : vector<16x32xf32>, vector<16x32xf32> -> vector<32x32xf32>
    %c0_6 = arith.constant 0 : index
    %c0_7 = arith.constant 0 : index
    %c0_8 = arith.constant 0 : index
    %21 = vector.load %arg4[%c0_6, %c0_7, %c0_8] : memref<2x16x32xf32, #tpu.memory_space<vmem>>, vector<2x16x32xf32>
    %22 = vector.shape_cast %21 : vector<2x16x32xf32> to vector<32x32xf32>
    %cst_9 = arith.constant 0.000000e+00 : f32
    %23 = vector.shape_cast %11 : vector<32x1xi1> to vector<32x1xi1>
    %24 = vector.broadcast %23 : vector<32x1xi1> to vector<32x32xi1>
    %25 = vector.broadcast %cst_9 : f32 to vector<32x32xf32>
    %26 = arith.select %24, %22, %25 : vector<32x32xi1>, vector<32x32xf32>
    %27 = arith.addf %26, %20 : vector<32x32xf32>
    %28 = arith.truncf %27 : vector<32x32xf32> to vector<32x32xbf16>
    %c0_10 = arith.constant 0 : index
    %c0_11 = arith.constant 0 : index
    %29 = vector.load %arg6[%c0_10, %c0_11] : memref<16x32xbf16, #tpu.memory_space<vmem>>, vector<16x32xbf16>
    %cst_12 = arith.constant dense<0.000000e+00> : vector<32x32xf32>
    %30 = tpu.matmul %18, %29, %cst_12 {dimension_numbers = #tpu.dot_dimension_numbers<[1], [0], [0], [1], [0, 0, 1, 1], [], []>} : vector<32x16xbf16>, vector<16x32xbf16>, vector<32x32xf32> -> vector<32x32xf32>
    %c0_13 = arith.constant 0 : index
    %c0_14 = arith.constant 0 : index
    %31 = vector.load %arg7[%c0_13, %c0_14] : memref<1x32xf32, #tpu.memory_space<vmem>>, vector<1x32xf32>
    %32 = vector.broadcast %31 : vector<1x32xf32> to vector<32x32xf32>
    %33 = arith.addf %30, %32 : vector<32x32xf32>
    %cst_15 = arith.constant 0.000000e+00 : f32
    %34 = vector.broadcast %cst_15 : f32 to vector<32x32xf32>
    %35 = arith.cmpf ogt, %33, %34 : vector<32x32xf32>
    %cst_16 = arith.constant 1.000000e-01 : f32
    %36 = vector.broadcast %cst_16 : f32 to vector<32x32xf32>
    %37 = arith.mulf %36, %33 : vector<32x32xf32>
    %38 = arith.select %35, %33, %37 : vector<32x32xi1>, vector<32x32xf32>
    %39 = arith.truncf %38 : vector<32x32xf32> to vector<32x32xbf16>
    %c0_17 = arith.constant 0 : index
    %c0_18 = arith.constant 0 : index
    %40 = vector.load %arg8[%c0_17, %c0_18] : memref<32x32xbf16, #tpu.memory_space<vmem>>, vector<32x32xbf16>
    %cst_19 = arith.constant dense<0.000000e+00> : vector<32x32xf32>
    %41 = tpu.matmul %39, %40, %cst_19 {dimension_numbers = #tpu.dot_dimension_numbers<[1], [0], [0], [1], [0, 0, 1, 1], [], []>} : vector<32x32xbf16>, vector<32x32xbf16>, vector<32x32xf32> -> vector<32x32xf32>
    %c0_20 = arith.constant 0 : index
    %c0_21 = arith.constant 0 : index
    %42 = vector.load %arg9[%c0_20, %c0_21] : memref<1x32xf32, #tpu.memory_space<vmem>>, vector<1x32xf32>
    %43 = vector.broadcast %42 : vector<1x32xf32> to vector<32x32xf32>
    %44 = arith.addf %41, %43 : vector<32x32xf32>
    %cst_22 = arith.constant 0.000000e+00 : f32
    %45 = vector.broadcast %cst_22 : f32 to vector<32x32xf32>
    %46 = arith.cmpf ogt, %44, %45 : vector<32x32xf32>
    %cst_23 = arith.constant 1.000000e-01 : f32
    %47 = vector.broadcast %cst_23 : f32 to vector<32x32xf32>
    %48 = arith.mulf %47, %44 : vector<32x32xf32>
    %49 = arith.select %46, %44, %48 : vector<32x32xi1>, vector<32x32xf32>
    %50 = arith.truncf %49 : vector<32x32xf32> to vector<32x32xbf16>
    %c0_24 = arith.constant 0 : index
    %c0_25 = arith.constant 0 : index
    %51 = vector.load %arg10[%c0_24, %c0_25] : memref<32x64xbf16, #tpu.memory_space<vmem>>, vector<32x64xbf16>
    %cst_26 = arith.constant dense<0.000000e+00> : vector<32x64xf32>
    %52 = tpu.matmul %50, %51, %cst_26 {dimension_numbers = #tpu.dot_dimension_numbers<[1], [0], [0], [1], [0, 0, 1, 1], [], []>} : vector<32x32xbf16>, vector<32x64xbf16>, vector<32x64xf32> -> vector<32x64xf32>
    %c0_27 = arith.constant 0 : index
    %c0_28 = arith.constant 0 : index
    %53 = vector.load %arg11[%c0_27, %c0_28] : memref<32x64xbf16, #tpu.memory_space<vmem>>, vector<32x64xbf16>
    %cst_29 = arith.constant dense<0.000000e+00> : vector<32x64xf32>
    %54 = tpu.matmul %28, %53, %cst_29 {dimension_numbers = #tpu.dot_dimension_numbers<[1], [0], [0], [1], [0, 0, 1, 1], [], []>} : vector<32x32xbf16>, vector<32x64xbf16>, vector<32x64xf32> -> vector<32x64xf32>
    %55 = arith.addf %52, %54 : vector<32x64xf32>
    %c0_30 = arith.constant 0 : index
    %c0_31 = arith.constant 0 : index
    %56 = vector.load %arg12[%c0_30, %c0_31] : memref<1x64xf32, #tpu.memory_space<vmem>>, vector<1x64xf32>
    %57 = vector.broadcast %56 : vector<1x64xf32> to vector<32x64xf32>
    %58 = arith.addf %55, %57 : vector<32x64xf32>
    %cst_32 = arith.constant 0.000000e+00 : f32
    %59 = vector.broadcast %cst_32 : f32 to vector<32x64xf32>
    %60 = arith.cmpf ogt, %58, %59 : vector<32x64xf32>
    %cst_33 = arith.constant 1.000000e-01 : f32
    %61 = vector.broadcast %cst_33 : f32 to vector<32x64xf32>
    %62 = arith.mulf %61, %58 : vector<32x64xf32>
    %63 = arith.select %60, %58, %62 : vector<32x64xi1>, vector<32x64xf32>
    %64 = arith.truncf %63 : vector<32x64xf32> to vector<32x64xbf16>
    %c0_34 = arith.constant 0 : index
    %c0_35 = arith.constant 0 : index
    %65 = vector.load %arg13[%c0_34, %c0_35] : memref<64x64xbf16, #tpu.memory_space<vmem>>, vector<64x64xbf16>
    %cst_36 = arith.constant dense<0.000000e+00> : vector<32x64xf32>
    %66 = tpu.matmul %64, %65, %cst_36 {dimension_numbers = #tpu.dot_dimension_numbers<[1], [0], [0], [1], [0, 0, 1, 1], [], []>} : vector<32x64xbf16>, vector<64x64xbf16>, vector<32x64xf32> -> vector<32x64xf32>
    %c0_37 = arith.constant 0 : index
    %c0_38 = arith.constant 0 : index
    %67 = vector.load %arg14[%c0_37, %c0_38] : memref<1x64xf32, #tpu.memory_space<vmem>>, vector<1x64xf32>
    %68 = vector.broadcast %67 : vector<1x64xf32> to vector<32x64xf32>
    %69 = arith.addf %66, %68 : vector<32x64xf32>
    %cst_39 = arith.constant 0.000000e+00 : f32
    %70 = vector.broadcast %cst_39 : f32 to vector<32x64xf32>
    %71 = arith.cmpf ogt, %69, %70 : vector<32x64xf32>
    %cst_40 = arith.constant 1.000000e-01 : f32
    %72 = vector.broadcast %cst_40 : f32 to vector<32x64xf32>
    %73 = arith.mulf %72, %69 : vector<32x64xf32>
    %74 = arith.select %71, %69, %73 : vector<32x64xi1>, vector<32x64xf32>
    %75 = arith.truncf %74 : vector<32x64xf32> to vector<32x64xbf16>
    %c0_41 = arith.constant 0 : index
    %c0_42 = arith.constant 0 : index
    %76 = vector.load %arg15[%c0_41, %c0_42] : memref<64x64xbf16, #tpu.memory_space<vmem>>, vector<64x64xbf16>
    %cst_43 = arith.constant dense<0.000000e+00> : vector<32x64xf32>
    %77 = tpu.matmul %75, %76, %cst_43 {dimension_numbers = #tpu.dot_dimension_numbers<[1], [0], [0], [1], [0, 0, 1, 1], [], []>} : vector<32x64xbf16>, vector<64x64xbf16>, vector<32x64xf32> -> vector<32x64xf32>
    %c0_44 = arith.constant 0 : index
    %c0_45 = arith.constant 0 : index
    %78 = vector.load %arg16[%c0_44, %c0_45] : memref<1x64xf32, #tpu.memory_space<vmem>>, vector<1x64xf32>
    %79 = vector.broadcast %78 : vector<1x64xf32> to vector<32x64xf32>
    %80 = arith.addf %77, %79 : vector<32x64xf32>
    %cst_46 = arith.constant 0.000000e+00 : f32
    %81 = vector.broadcast %cst_46 : f32 to vector<32x64xf32>
    %82 = arith.cmpf ogt, %80, %81 : vector<32x64xf32>
    %cst_47 = arith.constant 1.000000e-01 : f32
    %83 = vector.broadcast %cst_47 : f32 to vector<32x64xf32>
    %84 = arith.mulf %83, %80 : vector<32x64xf32>
    %85 = arith.select %82, %80, %84 : vector<32x64xi1>, vector<32x64xf32>
    %c2_i32 = arith.constant 2 : i32
    %86 = arith.muli %arg0, %c2_i32 : i32
    %c0_i32_48 = arith.constant 0 : i32
    %87 = arith.addi %86, %c0_i32_48 : i32
    %88 = arith.index_cast %87 : i32 to index
    %89 = memref.load %arg2[%88] : memref<2xi32, #tpu.memory_space<smem>>
    %90 = vector.broadcast %89 : i32 to vector<16x1xi32>
    %91 = arith.cmpi slt, %6, %90 : vector<16x1xi32>
    %92 = vector.extract_strided_slice %85 {offsets = [0, 0], sizes = [16, 64], strides = [1, 1]} : vector<32x64xf32> to vector<16x64xf32>
    %c0_49 = arith.constant 0 : index
    %c0_50 = arith.constant 0 : index
    %93 = vector.load %arg20[%c0_49, %c0_50] : memref<2x64xf32, #tpu.memory_space<vmem>>, vector<1x64xf32>
    %cst_51 = arith.constant 0.000000e+00 : f32
    %94 = vector.shape_cast %91 : vector<16x1xi1> to vector<16x1xi1>
    %95 = vector.broadcast %94 : vector<16x1xi1> to vector<16x64xi1>
    %96 = vector.broadcast %cst_51 : f32 to vector<16x64xf32>
    %97 = arith.select %95, %92, %96 : vector<16x64xi1>, vector<16x64xf32>
    %cst_52 = arith.constant dense<0.000000e+00> : vector<64xf32>
    %98 = vector.multi_reduction <add>, %97, %cst_52 [0] : vector<16x64xf32> to vector<64xf32>
    %99 = vector.shape_cast %98 : vector<64xf32> to vector<1x64xf32>
    %100 = arith.addf %93, %99 : vector<1x64xf32>
    %c0_53 = arith.constant 0 : index
    %c0_54 = arith.constant 0 : index
    %101 = vector.load %arg20[%c0_53, %c0_54] : memref<2x64xf32, #tpu.memory_space<vmem>>, vector<1x64xf32>
    tpu.vector_store %arg20[%c0_53, %c0_54], %100 {strides = array<i32>} : memref<2x64xf32, #tpu.memory_space<vmem>>, vector<1x64xf32>,
    %c0_55 = arith.constant 0 : index
    %c0_56 = arith.constant 0 : index
    %102 = vector.load %arg21[%c0_55, %c0_56] : memref<2x1xf32, #tpu.memory_space<vmem>>, vector<1x1xf32>
    %103 = arith.extui %91 : vector<16x1xi1> to vector<16x1xi32>
    %104 = arith.sitofp %103 : vector<16x1xi32> to vector<16x1xf32>
    %cst_57 = arith.constant dense<0.000000e+00> : vector<1xf32>
    %105 = vector.multi_reduction <add>, %104, %cst_57 [0] : vector<16x1xf32> to vector<1xf32>
    %106 = vector.shape_cast %105 : vector<1xf32> to vector<1x1xf32>
    %107 = arith.addf %102, %106 : vector<1x1xf32>
    %c0_58 = arith.constant 0 : index
    %c0_59 = arith.constant 0 : index
    %108 = vector.load %arg21[%c0_58, %c0_59] : memref<2x1xf32, #tpu.memory_space<vmem>>, vector<1x1xf32>
    tpu.vector_store %arg21[%c0_58, %c0_59], %107 {strides = array<i32>} : memref<2x1xf32, #tpu.memory_space<vmem>>, vector<1x1xf32>,
    %c2_i32_60 = arith.constant 2 : i32
    %109 = arith.muli %arg0, %c2_i32_60 : i32
    %c1_i32 = arith.constant 1 : i32
    %110 = arith.addi %109, %c1_i32 : i32
    %111 = arith.index_cast %110 : i32 to index
    %112 = memref.load %arg2[%111] : memref<2xi32, #tpu.memory_space<smem>>
    %113 = vector.broadcast %112 : i32 to vector<16x1xi32>
    %114 = arith.cmpi slt, %6, %113 : vector<16x1xi32>
    %115 = vector.extract_strided_slice %85 {offsets = [16, 0], sizes = [16, 64], strides = [1, 1]} : vector<32x64xf32> to vector<16x64xf32>
    %c1 = arith.constant 1 : index
    %c0_61 = arith.constant 0 : index
    %116 = vector.load %arg20[%c1, %c0_61] : memref<2x64xf32, #tpu.memory_space<vmem>>, vector<1x64xf32>
    %cst_62 = arith.constant 0.000000e+00 : f32
    %117 = vector.shape_cast %114 : vector<16x1xi1> to vector<16x1xi1>
    %118 = vector.broadcast %117 : vector<16x1xi1> to vector<16x64xi1>
    %119 = vector.broadcast %cst_62 : f32 to vector<16x64xf32>
    %120 = arith.select %118, %115, %119 : vector<16x64xi1>, vector<16x64xf32>
    %cst_63 = arith.constant dense<0.000000e+00> : vector<64xf32>
    %121 = vector.multi_reduction <add>, %120, %cst_63 [0] : vector<16x64xf32> to vector<64xf32>
    %122 = vector.shape_cast %121 : vector<64xf32> to vector<1x64xf32>
    %123 = arith.addf %116, %122 : vector<1x64xf32>
    %c1_64 = arith.constant 1 : index
    %c0_65 = arith.constant 0 : index
    %124 = vector.load %arg20[%c1_64, %c0_65] : memref<2x64xf32, #tpu.memory_space<vmem>>, vector<1x64xf32>
    tpu.vector_store %arg20[%c1_64, %c0_65], %123 {strides = array<i32>} : memref<2x64xf32, #tpu.memory_space<vmem>>, vector<1x64xf32>,
    %c1_66 = arith.constant 1 : index
    %c0_67 = arith.constant 0 : index
    %125 = vector.load %arg21[%c1_66, %c0_67] : memref<2x1xf32, #tpu.memory_space<vmem>>, vector<1x1xf32>
    %126 = arith.extui %114 : vector<16x1xi1> to vector<16x1xi32>
    %127 = arith.sitofp %126 : vector<16x1xi32> to vector<16x1xf32>
    %cst_68 = arith.constant dense<0.000000e+00> : vector<1xf32>
    %128 = vector.multi_reduction <add>, %127, %cst_68 [0] : vector<16x1xf32> to vector<1xf32>
    %129 = vector.shape_cast %128 : vector<1xf32> to vector<1x1xf32>
    %130 = arith.addf %125, %129 : vector<1x1xf32>
    %c1_69 = arith.constant 1 : index
    %c0_70 = arith.constant 0 : index
    %131 = vector.load %arg21[%c1_69, %c0_70] : memref<2x1xf32, #tpu.memory_space<vmem>>, vector<1x1xf32>
    tpu.vector_store %arg21[%c1_69, %c0_70], %130 {strides = array<i32>} : memref<2x1xf32, #tpu.memory_space<vmem>>, vector<1x1xf32>,
    %c1_i32_71 = arith.constant 1 : i32
    %132 = arith.cmpi eq, %arg1, %c1_i32_71 : i32
    %133 = arith.extui %132 : i1 to i32
    %c0_i32_72 = arith.constant 0 : i32
    %134 = arith.cmpi ne, %133, %c0_i32_72 : i32
    scf.if %134 {
      %c0_73 = arith.constant 0 : index
      %c0_74 = arith.constant 0 : index
      %135 = vector.load %arg20[%c0_73, %c0_74] : memref<2x64xf32, #tpu.memory_space<vmem>>, vector<1x64xf32>
      %c0_75 = arith.constant 0 : index
      %c0_76 = arith.constant 0 : index
      %136 = vector.load %arg21[%c0_75, %c0_76] : memref<2x1xf32, #tpu.memory_space<vmem>>, vector<1x1xf32>
      %c0_77 = arith.constant 0 : index
      %c0_78 = arith.constant 0 : index
      %137 = vector.load %arg17[%c0_77, %c0_78] : memref<1x64xf32, #tpu.memory_space<vmem>>, vector<1x64xf32>
      %138 = arith.mulf %135, %137 : vector<1x64xf32>
      %cst_79 = arith.constant dense<0.000000e+00> : vector<1xf32>
      %139 = vector.multi_reduction <add>, %138, %cst_79 [1] : vector<1x64xf32> to vector<1xf32>
      %140 = vector.shape_cast %139 : vector<1xf32> to vector<1x1xf32>
      %c0_80 = arith.constant 0 : index
      %c0_81 = arith.constant 0 : index
      %141 = vector.load %arg18[%c0_80, %c0_81] : memref<1x1xf32, #tpu.memory_space<vmem>>, vector<1x1xf32>
      %142 = arith.mulf %141, %136 : vector<1x1xf32>
      %143 = arith.addf %140, %142 : vector<1x1xf32>
      %144 = arith.divf %143, %136 : vector<1x1xf32>
      %c0_82 = arith.constant 0 : index
      %c0_83 = arith.constant 0 : index
      %c0_84 = arith.constant 0 : index
      %145 = vector.load %arg19[%c0_82, %c0_83, %c0_84] : memref<2x1x1xf32, #tpu.memory_space<vmem>>, vector<1x1x1xf32>
      %146 = vector.shape_cast %145 : vector<1x1x1xf32> to vector<1x1xf32>
      %147 = vector.shape_cast %144 : vector<1x1xf32> to vector<1x1x1xf32>
      tpu.vector_store %arg19[%c0_82, %c0_83, %c0_84], %147 {strides = array<i32>} : memref<2x1x1xf32, #tpu.memory_space<vmem>>, vector<1x1x1xf32>,
      %c1_85 = arith.constant 1 : index
      %c0_86 = arith.constant 0 : index
      %148 = vector.load %arg20[%c1_85, %c0_86] : memref<2x64xf32, #tpu.memory_space<vmem>>, vector<1x64xf32>
      %c1_87 = arith.constant 1 : index
      %c0_88 = arith.constant 0 : index
      %149 = vector.load %arg21[%c1_87, %c0_88] : memref<2x1xf32, #tpu.memory_space<vmem>>, vector<1x1xf32>
      %c0_89 = arith.constant 0 : index
      %c0_90 = arith.constant 0 : index
      %150 = vector.load %arg17[%c0_89, %c0_90] : memref<1x64xf32, #tpu.memory_space<vmem>>, vector<1x64xf32>
      %151 = arith.mulf %148, %150 : vector<1x64xf32>
      %cst_91 = arith.constant dense<0.000000e+00> : vector<1xf32>
      %152 = vector.multi_reduction <add>, %151, %cst_91 [1] : vector<1x64xf32> to vector<1xf32>
      %153 = vector.shape_cast %152 : vector<1xf32> to vector<1x1xf32>
      %c0_92 = arith.constant 0 : index
      %c0_93 = arith.constant 0 : index
      %154 = vector.load %arg18[%c0_92, %c0_93] : memref<1x1xf32, #tpu.memory_space<vmem>>, vector<1x1xf32>
      %155 = arith.mulf %154, %149 : vector<1x1xf32>
      %156 = arith.addf %153, %155 : vector<1x1xf32>
      %157 = arith.divf %156, %149 : vector<1x1xf32>
      %c1_94 = arith.constant 1 : index
      %c0_95 = arith.constant 0 : index
      %c0_96 = arith.constant 0 : index
      %158 = vector.load %arg19[%c1_94, %c0_95, %c0_96] : memref<2x1x1xf32, #tpu.memory_space<vmem>>, vector<1x1x1xf32>
      %159 = vector.shape_cast %158 : vector<1x1x1xf32> to vector<1x1xf32>
      %160 = vector.shape_cast %157 : vector<1x1xf32> to vector<1x1x1xf32>
      tpu.vector_store %arg19[%c1_94, %c0_95, %c0_96], %160 {strides = array<i32>} : memref<2x1x1xf32, #tpu.memory_space<vmem>>, vector<1x1x1xf32>,
    } else {
    }
    return
  }
  func.func @transform_0(%arg0: i32, %arg1: i32, %arg2: memref<2xi32, #tpu.memory_space<smem>>) -> (i32, i32, i32) {
    %c0_i32 = arith.constant 0 : i32
    %c0_i32_0 = arith.constant 0 : i32
    return %arg0, %arg1, %c0_i32 : i32, i32, i32
  }
  func.func @transform_1(%arg0: i32, %arg1: i32, %arg2: memref<2xi32, #tpu.memory_space<smem>>) -> (i32, i32, i32) {
    %c0_i32 = arith.constant 0 : i32
    %0 = arith.minsi %arg1, %c0_i32 : i32
    %c0_i32_0 = arith.constant 0 : i32
    %c0_i32_1 = arith.constant 0 : i32
    return %arg0, %0, %c0_i32_0 : i32, i32, i32
  }
  func.func @transform_2(%arg0: i32, %arg1: i32, %arg2: memref<2xi32, #tpu.memory_space<smem>>) -> (i32, i32) {
    %c0_i32 = arith.constant 0 : i32
    %c0_i32_0 = arith.constant 0 : i32
    return %arg1, %c0_i32 : i32, i32
  }
  func.func @transform_3(%arg0: i32, %arg1: i32, %arg2: memref<2xi32, #tpu.memory_space<smem>>) -> (i32, i32) {
    %c0_i32 = arith.constant 0 : i32
    %c0_i32_0 = arith.constant 0 : i32
    %c0_i32_1 = arith.constant 0 : i32
    return %c0_i32, %c0_i32_0 : i32, i32
  }
  func.func @transform_4(%arg0: i32, %arg1: i32, %arg2: memref<2xi32, #tpu.memory_space<smem>>) -> (i32, i32) {
    %c0_i32 = arith.constant 0 : i32
    %c0_i32_0 = arith.constant 0 : i32
    %c0_i32_1 = arith.constant 0 : i32
    return %c0_i32, %c0_i32_0 : i32, i32
  }
  func.func @transform_5(%arg0: i32, %arg1: i32, %arg2: memref<2xi32, #tpu.memory_space<smem>>) -> (i32, i32) {
    %c0_i32 = arith.constant 0 : i32
    %c0_i32_0 = arith.constant 0 : i32
    %c0_i32_1 = arith.constant 0 : i32
    return %c0_i32, %c0_i32_0 : i32, i32
  }
  func.func @transform_6(%arg0: i32, %arg1: i32, %arg2: memref<2xi32, #tpu.memory_space<smem>>) -> (i32, i32) {
    %c0_i32 = arith.constant 0 : i32
    %c0_i32_0 = arith.constant 0 : i32
    %c0_i32_1 = arith.constant 0 : i32
    return %c0_i32, %c0_i32_0 : i32, i32
  }
  func.func @transform_7(%arg0: i32, %arg1: i32, %arg2: memref<2xi32, #tpu.memory_space<smem>>) -> (i32, i32) {
    %c0_i32 = arith.constant 0 : i32
    %c0_i32_0 = arith.constant 0 : i32
    %c0_i32_1 = arith.constant 0 : i32
    return %c0_i32, %c0_i32_0 : i32, i32
  }
  func.func @transform_8(%arg0: i32, %arg1: i32, %arg2: memref<2xi32, #tpu.memory_space<smem>>) -> (i32, i32) {
    %c0_i32 = arith.constant 0 : i32
    %c0_i32_0 = arith.constant 0 : i32
    %c0_i32_1 = arith.constant 0 : i32
    return %c0_i32, %c0_i32_0 : i32, i32
  }
  func.func @transform_9(%arg0: i32, %arg1: i32, %arg2: memref<2xi32, #tpu.memory_space<smem>>) -> (i32, i32) {
    %c0_i32 = arith.constant 0 : i32
    %c0_i32_0 = arith.constant 0 : i32
    %c0_i32_1 = arith.constant 0 : i32
    return %c0_i32, %c0_i32_0 : i32, i32
  }
  func.func @transform_10(%arg0: i32, %arg1: i32, %arg2: memref<2xi32, #tpu.memory_space<smem>>) -> (i32, i32) {
    %c0_i32 = arith.constant 0 : i32
    %c0_i32_0 = arith.constant 0 : i32
    %c0_i32_1 = arith.constant 0 : i32
    return %c0_i32, %c0_i32_0 : i32, i32
  }
  func.func @transform_11(%arg0: i32, %arg1: i32, %arg2: memref<2xi32, #tpu.memory_space<smem>>) -> (i32, i32) {
    %c0_i32 = arith.constant 0 : i32
    %c0_i32_0 = arith.constant 0 : i32
    %c0_i32_1 = arith.constant 0 : i32
    return %c0_i32, %c0_i32_0 : i32, i32
  }
  func.func @transform_12(%arg0: i32, %arg1: i32, %arg2: memref<2xi32, #tpu.memory_space<smem>>) -> (i32, i32) {
    %c0_i32 = arith.constant 0 : i32
    %c0_i32_0 = arith.constant 0 : i32
    %c0_i32_1 = arith.constant 0 : i32
    return %c0_i32, %c0_i32_0 : i32, i32
  }
  func.func @transform_13(%arg0: i32, %arg1: i32, %arg2: memref<2xi32, #tpu.memory_space<smem>>) -> (i32, i32) {
    %c0_i32 = arith.constant 0 : i32
    %c0_i32_0 = arith.constant 0 : i32
    %c0_i32_1 = arith.constant 0 : i32
    return %c0_i32, %c0_i32_0 : i32, i32
  }
  func.func @transform_14(%arg0: i32, %arg1: i32, %arg2: memref<2xi32, #tpu.memory_space<smem>>) -> (i32, i32) {
    %c0_i32 = arith.constant 0 : i32
    %c0_i32_0 = arith.constant 0 : i32
    %c0_i32_1 = arith.constant 0 : i32
    return %c0_i32, %c0_i32_0 : i32, i32
  }
  func.func @transform_15(%arg0: i32, %arg1: i32, %arg2: memref<2xi32, #tpu.memory_space<smem>>) -> (i32, i32) {
    %c0_i32 = arith.constant 0 : i32
    %c0_i32_0 = arith.constant 0 : i32
    %c0_i32_1 = arith.constant 0 : i32
    return %c0_i32, %c0_i32_0 : i32, i32
  }
  func.func @transform_16(%arg0: i32, %arg1: i32, %arg2: memref<2xi32, #tpu.memory_space<smem>>) -> (i32, i32, i32) {
    %c0_i32 = arith.constant 0 : i32
    %c0_i32_0 = arith.constant 0 : i32
    %c0_i32_1 = arith.constant 0 : i32
    return %arg0, %c0_i32, %c0_i32_0 : i32, i32, i32
  }
}

</mosaic_0001>

<bundles_post_ra>
// kernel: tpu_custom_call.1
= control target key start
LH: loop header
LB: loop body
LE: loop exit
PB: predicated region body
PF: predicated region fallthrough
CT: control target
= control target key end

     0   :  { %s2186_s29 = smov [#allocation5]   ;;  %s2589_s0 = inlined_call_operand.vmem [shape: s32[2], index: 0, kind: input, shape index: {}]   ;;  %s2590_s1 = inlined_call_operand.vmem [shape: f32[2,24,16], index: 1, kind: input, shape index: {}]   ;;  %s2591_s2 = inlined_call_operand.vmem [shape: f32[2,16,32], index: 2, kind: input, shape index: {}]   ;;  %s2592_s3 = inlined_call_operand.vmem [shape: f32[32,32], index: 3, kind: input, shape index: {}]   ;;  %s2593_s4 = inlined_call_operand.hbm [shape: bf16[16,32], index: 4, kind: input, shape index: {}]   ;;  %s2594_s5 = inlined_call_operand.vmem [shape: f32[1,32], index: 5, kind: input, shape index: {}]   ;;  %s2595_s6 = inlined_call_operand.vmem [shape: bf16[32,32], index: 6, kind: input, shape index: {}]   ;;  %s2596_s7 = inlined_call_operand.vmem [shape: f32[1,32], index: 7, kind: input, shape index: {}]   ;;  %s2597_s8 = inlined_call_operand.hbm [shape: bf16[32,64], index: 8, kind: input, shape index: {}]   ;;  %s2598_s9 = inlined_call_operand.hbm [shape: bf16[32,64], index: 9, kind: input, shape index: {}]   ;;  %s2599_s10 = inlined_call_operand.vmem [shape: f32[1,64], index: 10, kind: input, shape index: {}]   ;;  %s2600_s11 = inlined_call_operand.hbm [shape: bf16[64,64], index: 11, kind: input, shape index: {}]   ;;  %s2601_s12 = inlined_call_operand.vmem [shape: f32[1,64], index: 12, kind: input, shape index: {}]   ;;  %s2602_s13 = inlined_call_operand.hbm [shape: bf16[64,64], index: 13, kind: input, shape index: {}]   ;;  %s2603_s14 = inlined_call_operand.vmem [shape: f32[1,64], index: 14, kind: input, shape index: {}]   ;;  %s2604_s15 = inlined_call_operand.vmem [shape: f32[1,64], index: 15, kind: input, shape index: {}]   ;;  %s2605_s17 = inlined_call_operand.vmem [shape: f32[2,1,1], index: 17, kind: output, shape index: {}]   ;;  %s2606_s16 = inlined_call_operand.<no memory space> [shape: f32[1,1], index: 16, kind: input, shape index: {}]  }
   0x1   :  { %2610 = sst [smem:[#allocation22_spill]] %s2589_s0  ;;  %v27_v0 = vstv %s2606_s16 }
   0x2   :  { %2611 = sst [smem:[#allocation23_spill]] %s2590_s1  ;;  %28 = vst [vmem:[#allocation6] sm:$0x1] %v27_v0 }
   0x3   :  { %2612 = sst [smem:[#allocation24_spill]] %s2596_s7 }
   0x4   :  { %2613 = sst [smem:[#allocation25_spill]] %s2597_s8 }
   0x5   :  { %2614 = sst [smem:[#allocation26_spill]] %s2599_s10 }
   0x6   :  { %2615 = sst [smem:[#allocation27_spill]] %s2600_s11 }
   0x7   :  { %2616 = sst [smem:[#allocation28_spill]] %s2601_s12 }
   0x8   :  { %2617 = sst [smem:[#allocation29_spill]] %s2603_s14 }
   0x9   :  { %2618 = sst [smem:[#allocation30_spill]] %s2604_s15 }
   0xa   :  { %2619 = sst [smem:[#allocation31_spill]] %s2605_s17 }
   0xb   :  { %s2620_s26 = sld [smem:[#allocation22_spill]] }
  0x11   :  { %s23_s10 = sshll.u32 %s2620_s26, 4  ;;  %s24_s10 = int_to_ptr.vmem [resolvable:$true] %s23_s10 }
  0x12   :  { %26 = dma.vmem_to_smem %s24_s10, 16, %s2186_s29, [#allocation4] }
  0x13   :  { %2120 = dma.done.wait [#allocation4], 16 }
  0x14   :  { %2121 = vsyncadd [#allocation4], 4294967280 }
  0x15   :  { %31 = sfence }
  0x16   :  { %32 = vsyncpa [#allocation9], 0 }
  0x17   :  { %33 = vsyncpa [#allocation11], 0 }
  0x18   :  { %34 = vsyncpa [#allocation14], 0  ;;  %s2293_s0 = smov 0   ;;  %s2295_s30 = smov 0  }
  0x19   :  { %s2297_s18 = smov 0   ;;  %s2299_s19 = smov 0  }
  0x1a   :  { %s2301_s1 = smov 0  }
  0x1b LB: > { %s1594_s10 = sadd.s32 4294967295, %s2152_s1   ;;  %s49_s16 = sadd.s32 1, %s2148_s19  ;;  %s2152_s1 = sphi %s2301_s1, %s40_s1   ;;  %s2148_s19 = sphi %s2299_s19, %s2652_s19   ;;  %s2144_s18 = sphi %s2297_s18, %s2651_s18   ;;  %s2140_s30 = sphi %s2295_s30, %s2650_s30   ;;  %s2136_s0 = sphi %s2293_s0, %s2649_s0  }
  0x1c   : > { %p50_p0 = scmp.ge.s32.totalorder %s49_s16, 2  ;;  %s61_s20 = sadd.s32 1, %s2140_s30 }
  0x1d   : > { %p68_p1 = scmp.ne.s32.totalorder %s2140_s30, %s2136_s0  ;;  %p69_p2 = scmp.eq.s32.totalorder %s2152_s1, 0 }
  0x1e   : > { %s2654_s16 = smov (%p50_p0, %s49_s16), 0  ;;  %p1595_p4 = scmp.ge.s32.totalorder %s2152_s1, 1 }
  0x1f   : > { %2621 = sst [smem:[#allocation20_spill]] %s2654_s16  ;;  %p2326_p3 = por %p69_p2, %p68_p1 }
  0x20   : > { %s57_s22 = ssub.s32 %s2148_s19, %s2654_s16  ;;  %p442_p5 = scmp.lt.s32.totalorder %s2152_s1, 3 }
  0x21   : > { %p59_p6 = scmp.eq.s32.totalorder %s57_s22, 0  ;;  %p2338_p8 = scmp.eq.s32.totalorder %s1594_s10, 0 }
  0x22   : > { %p2334_p7 = pnand %p1595_p4, %p442_p5  ;;  %s2626_s8 = sld [smem:[#allocation25_spill]] }
  0x23   : > { %s2343_s25 = scalar_select %p59_p6, %s2140_s30, %s61_s20  }
  0x24   : > { %p1754_p9 = pneg %p2334_p7  ;;  %s2628_s11 = sld [smem:[#allocation27_spill]] }
  0x25   : > { %2625 = sst [smem:[#allocation21_spill]] %s2343_s25  ;;  %s2187_s20 = smov [#allocation10]  }
  0x26   : > { %p2352_p10 = pnand %p2338_p8, %p1754_p9  ;;  %s478_s25 = sshll.u32 %s2187_s20, 4  ;;  %s479_s25 = int_to_ptr.vmem [resolvable:$true] %s478_s25 }
  0x27   : > { %s2188_s17 = smov 64   ;;  %s2189_s26 = smov 4  }
  0x28   : > { %s476_s28 = sshll.u32 %s2626_s8, 4  ;;  %s2190_s27 = smov [#allocation13]   ;;  %s477_s28 = int_to_ptr.hbm [resolvable:$true] %s476_s28 }
  0x29   : > { %1760 = dma.hbm_to_vmem [thread:$0]  (!%p2352_p10), %s477_s28, 256, %s479_s25, [#allocation11], %s2188_s17, %s2188_s17, %s2189_s26  }
  0x2a   : > { %s507_s16 = sshll.u32 %s2628_s11, 4  ;;  %s509_s8 = sshll.u32 %s2190_s27, 4  ;;  %s508_s16 = int_to_ptr.hbm [resolvable:$true] %s507_s16  ;;  %s510_s8 = int_to_ptr.vmem [resolvable:$true] %s509_s8 }
  0x2b   : > { %s453_s12 = sshll.u32 %s2593_s4, 4  ;;  %s2191_s10 = smov [#allocation8]   ;;  %s454_s12 = int_to_ptr.hbm [resolvable:$true] %s453_s12 }
  0x2c   : > { %1766 = dma.hbm_to_vmem [thread:$0]  (!%p2352_p10), %s508_s16, 512, %s510_s8, [#allocation14], %s2188_s17, %s2188_s17, %s2189_s26  }
  0x2d   : > { %s455_s22 = sshll.u32 %s2191_s10, 4  ;;  %s490_s7 = sshll.u32 %s2598_s9, 4  ;;  %s456_s22 = int_to_ptr.vmem [resolvable:$true] %s455_s22  ;;  %s491_s7 = int_to_ptr.hbm [resolvable:$true] %s490_s7 }
  0x2e   : > { %1757 = dma.hbm_to_vmem [thread:$0]  (!%p2352_p10), %s454_s12, 128, %s456_s22, [#allocation9], %s2188_s17, %s2188_s17, %s2189_s26  }
  0x2f   : > { %s524_s27 = sshll.u32 %s2602_s13, 4  ;;  %s2192_s14 = smov [#allocation12]   ;;  %s525_s27 = int_to_ptr.hbm [resolvable:$true] %s524_s27 }
  0x30   : > { %s492_s15 = sshll.u32 %s2192_s14, 4  ;;  %s2193_s8 = smov [#allocation15]   ;;  %s493_s15 = int_to_ptr.vmem [resolvable:$true] %s492_s15 }
  0x31   : > { %1763 = dma.hbm_to_vmem [thread:$0]  (!%p2352_p10), %s491_s7, 256, %s493_s15, [#allocation11], %s2188_s17, %s2188_s17, %s2189_s26  }
  0x32   : > { %s526_s16 = sshll.u32 %s2193_s8, 4  ;;  %p1601_p11 = scmp.ge.s32.totalorder %s2152_s1, 2  ;;  %s527_s16 = int_to_ptr.vmem [resolvable:$true] %s526_s16 }
  0x33   : > { %1769 = dma.hbm_to_vmem [thread:$0]  (!%p2352_p10), %s525_s27, 512, %s527_s16, [#allocation14], %s2188_s17, %s2188_s17, %s2189_s26  }
  0x34   : > { %545 = sbr.rel (%p1601_p11) target bundleno = 101 (0x65), region = 68 }
  0x39   : > { %548 = sbr.rel (!%p2326_p3) target bundleno = 101 (0x65), region = 72  ;;  %s550_s11 = sand.u32 (%p2326_p3), 1, %s2140_s30  }
  0x3a   : > { %s1603_s12 = sshll.u32 (%p2326_p3), %s2148_s19, 1  ;;  %s1602_s10 = sshll.u32 (%p2326_p3), %s550_s11, 5 }
  0x3b   : > { %s555_s22 = ssub.s32 (%p2326_p3), 3, %s1603_s12  ;;  %s1713_s7 = sshll.u32 (%p2326_p3), %s2148_s19, 4 }
  0x3c   : > { %p556_p12 = scmp.lt.s32.totalorder (%p2326_p3), %s555_s22, 2  ;;  %s2629_s17 = sld [smem:[#allocation23_spill]] (%p2326_p3) }
  0x3d   : > { %s2392_s21 = scalar_lea.vmem (%p2326_p3), [#allocation7], %s1602_s10  }
  0x3e   : > { %s2656_s22 = smov (!%p556_p12, %s555_s22), 2 }
  0x3f   : > { %s1604_s25 = sshll.u32 %s2656_s22, 4 }
  0x40   : > { %p1607_p13 = scmp.eq.s32.totalorder %s1604_s25, 0 }
  0x41   : > { %s2395_s28 = sshrl.u32 (!%p1607_p13), %s2656_s22, 1 }
  0x42   : > { %s2389_s26 = scalar_lea.vmem %s2629_s17, %s1713_s7   ;;  %566 = sbr.rel (%p1607_p13) target bundleno = 101 (0x65), region = 76 }
  0x43   : > { %p1608_p0 = scmp.le.s32.totalorder (!%p1607_p13), %s2395_s28, 0 }
  0x47   : > { %1488 = sbr.rel (%p1608_p0) target bundleno = 84 (0x54), region = 209  ;;  %s2630_s27 = smov (!%p1608_p0), %s2392_s21 }
  0x48   : > { %s2631_s14 = smov (!%p1608_p0), %s2389_s26  ;;  %s2404_s15 = smov (!%p1608_p0), 0  }
  0x49   : > { %s2166_s8 = smov (!%p1608_p0), 0  }
  0x4c LB: >> { %v637_v1 = vld [vmem:[%s2160_s14] sm:$0xff]  ;;  %v639_v2 = vld [vmem:[%s2160_s14 + $0x8] sm:$0xff]  ;;  %v641_v3 = vld [vmem:[%s2160_s14 + $0x18] sm:$0xff]  ;;  %s645_s16 = sadd.s32 1, %s2164_s15  ;;  %s631_s8 = sadd.s32 1, %s2168_s8   ;;  %s2168_s8 = sphi %s2166_s8, %s631_s8   ;;  %s2164_s15 = sphi %s2404_s15, %s2632_s15   ;;  %s2160_s14 = sphi %s2631_s14, %s650_s14   ;;  %s2156_s27 = sphi %s2630_s27, %s651_s27  }
  0x4d   : >> { %638 = vst [vmem:[%s2156_s27] sm:$0xff] %v637_v1  ;;  %v643_v4 = vld [vmem:[%s2160_s14 + $0x20] sm:$0xff]  ;;  %p646_p1 = scmp.ge.s32.totalorder %s645_s16, %s2395_s28  ;;  %p630_p2 = scmp.ge.s32.totalorder %s631_s8, %s2395_s28 }
  0x4e   : >> { %640 = vst [vmem:[%s2156_s27 + $0x8] sm:$0xff] %v639_v2 }
  0x4f   : >> { %642 = vst [vmem:[%s2156_s27 + $0x10] sm:$0xff] %v641_v3  ;;  %s2658_s16 = smov (%p646_p1, %s645_s16), 0  ;;  %633 = sbr.rel (!%p630_p2) target bundleno = 76 (0x4c), region = 215 }
  0x50   : >> { %644 = vst [vmem:[%s2156_s27 + $0x18] sm:$0xff] %v643_v4  ;;  %s1609_s11 = sshll.u32 %s2658_s16, 4  ;;  %s2632_s15 = smov %s2658_s16 }
  0x51   : >> { %s650_s14 = scalar_lea.vmem %s2389_s26, %s1609_s11   ;;  %s651_s27 = scalar_lea.vmem %s2392_s21, %s1609_s11 [#allocation7]  }
  0x54 PF: > { %s2420_s12 = sand.u32 1, %s2656_s22   ;;  %s1714_s10 = sshll.u32 %s2395_s28, 4 }
  0x55   : > { %s2424_s7 = scalar_lea.vmem %s2389_s26, %s1714_s10   ;;  %s658_s20 = scalar_lea.vmem %s2392_s21, %s1714_s10 [#allocation7]  }
  0x56   : > { %p1614_p3 = scmp.le.s32.totalorder %s2420_s12, 0 }
  0x57   : > { %s2170_s29 = smov (!%p1614_p3), %s658_s20   ;;  %s2174_s17 = smov (!%p1614_p3), %s2424_s7  }
  0x58   : > { %1502 = sbr.rel (%p1614_p3) target bundleno = 101 (0x65), region = 220  ;;  %s2178_s25 = smov (!%p1614_p3), 0  }
  0x59   : > { %s2182_s15 = smov (!%p1614_p3), 0  }
  0x5d LB: >> { %v668_v5 = vld [vmem:[%s2176_s17] sm:$0xff]  ;;  %v670_v6 = vld [vmem:[%s2176_s17 + $0x18] sm:$0xff]  ;;  %s672_s22 = sadd.s32 1, %s2180_s25  ;;  %s662_s15 = sadd.s32 1, %s2184_s15   ;;  %s2184_s15 = sphi %s2182_s15, %s662_s15   ;;  %s2180_s25 = sphi %s2178_s25, %s2179_s25   ;;  %s2176_s17 = sphi %s2174_s17, %s677_s17   ;;  %s2172_s29 = sphi %s2170_s29, %s678_s29  }
  0x5e   : >> { %669 = vst [vmem:[%s2172_s29] sm:$0xff] %v668_v5  ;;  %p673_p4 = scmp.ge.s32.totalorder %s672_s22, %s2420_s12  ;;  %p661_p5 = scmp.ge.s32.totalorder %s662_s15, %s2420_s12 }
  0x5f   : >> { %671 = vst [vmem:[%s2172_s29 + $0x10] sm:$0xff] %v670_v6 }
  0x60   : >> { %s2660_s22 = smov (%p673_p4, %s672_s22), 0  ;;  %664 = sbr.rel (!%p661_p5) target bundleno = 93 (0x5d), region = 226 }
  0x61   : >> { %s1615_s26 = sshll.u32 %s2660_s22, 3  ;;  %s2179_s25 = smov %s2660_s22  }
  0x62   : >> { %s677_s17 = scalar_lea.vmem %s2424_s7, %s1615_s26   ;;  %s678_s29 = scalar_lea.vmem %s658_s20, %s1615_s26 [#allocation7]  }
  0x65 PF: > { %715 = sbr.rel (%p2334_p7) target bundleno = 1140 (0x474), region = 132  ;;  %s718_s21 = sand.u32 (!%p2334_p7), 1, %s2136_s0  }
  0x66   : > { %s1618_s28 = sshll.u32 (!%p2334_p7), %s718_s21, 5 }
  0x67   : > { %s2435_s27 = scalar_lea.vmem (!%p2334_p7), [#allocation7], %s1618_s28 }
  0x6a   : > { %2123 = dma.done.wait (%p2338_p8), [#allocation9], 128  }
  0x6b   : > { %2125 = vsyncadd (%p2338_p8), [#allocation9], 4294967168 }
  0x6c   : > { %2127 = dma.done.wait (%p2338_p8), [#allocation11], 512  }
  0x6d   : > { %2129 = vsyncadd (%p2338_p8), [#allocation11], 4294966784 }
  0x6e   : > { %2131 = dma.done.wait (%p2338_p8), [#allocation14], 1024  }
  0x6f   : > { %2133 = vsyncadd (%p2338_p8), [#allocation14], 4294966272  ;;  %p814_p6 = scmp.lt.s32.totalorder %s2144_s18, 0  ;;  %s1626_s0 = sshll.u32 %s2144_s18, 1 }
  0x70   : > { %p831_p7 = scmp.lt.s32.totalorder %s1626_s0, 3  ;;  %p1628_p8 = scmp.ne.s32.totalorder %s2144_s18, 0 }
  0x71   : > { %s815_s23 = scalar_select %p814_p6, %s2144_s18, 0 }
  0x72   : > { %s2662_s0 = smov (!%p831_p7, %s1626_s0), 3 }
  0x73   : > { %s1624_s14 = sshll.u32 %s815_s23, 1  ;;  %s1627_s8 = sshll.u32 %s2662_s0, 3 }
  0x74   : > { %p820_p9 = scmp.lt.s32.totalorder %s1624_s14, 1  ;;  %s2455_s12 = scalar_lea.vmem %s2592_s3, %s1627_s8 }
  0x75   : > { %845 = sbr.rel (%p1628_p8) target bundleno = 125 (0x7d), region = 160 }
  0x76   : > { %s2664_s14 = smov (!%p820_p9, %s1624_s14), 1 }
  0x77   : > { %s1625_s10 = sshll.u32 %s2664_s14, 3 }
  0x78   : > { %s2460_s20 = scalar_lea.vmem %s2591_s2, %s1625_s10 }
  0x7a   : > { %vm846_vm0 = vcmask 517120   ;;  %vm848_vm1 = vcmask 1024   ;;  %v2194_v7 = vmov 0.0  }
  0x7b   : > { %847 = vst.msk [vmem:[#allocation2] sm:$0x3] %vm846_vm0, %v2194_v7 }
  0x7c   : > { %849 = vst.msk [vmem:[#allocation3] sm:$0x3] %vm848_vm1, %v2194_v7 }
  0x7d PF: > { %s1629_s29 = sshll.u32 %s2144_s18, 4  ;;  %v851_v8 = vlaneseq  ;;  %v2195_v9 = vmov 0   ;;  %v1716_v17 = vld [vmem:[#allocation8] sm:$0xff]  ;;  %v863_v21 = vld [vmem:[%s2435_s27 + $0x10] sm:$0xff]  ;;  %v862_v22 = vld [vmem:[%s2435_s27 + $0x8] sm:$0xff]  ;;  %vm919_vm7 = vcmask 130048  }
  0x7e   : > { %1895 = vset.pattern.permute.xlu0 %v2195_v9  ;;  %v854_v10 = vstv %s1629_s29  ;;  %1896 = vset.pattern.permute.xlu1 %v2195_v9  ;;  %v861_v20 = vld [vmem:[%s2435_s27] sm:$0xff]  ;;  %v864_v23 = vld [vmem:[%s2435_s27 + $0x18] sm:$0xff]  ;;  %vm979_vm11 = vcmask 261120   ;;  %v885_v2 = vld [vmem:[%s2460_s20 + $0x10] sm:$0xff]  ;;  %s2633_s0 = sld [smem:[#allocation24_spill]]  ;;  %p1707_p10 = scmp.ne.s32.totalorder %s2144_s18, 1 }
  0x7f   : > { %v852_v11 = vshrl.u32 %v851_v8, 7  ;;  %933 = vmatpush.bf16.msra.mxu0 %v1716_v17  ;;  %1731 = vmatpush.bf16.msra.mxu3 %v1716_v17  ;;  %v1718_v32 = vld [vmem:[%s2595_s6 + $0x8] sm:$0xff]  ;;  %v1717_v33 = vld [vmem:[%s2595_s6] sm:$0xff]  ;;  %v886_v3 = vld [vmem:[%s2460_s20 + $0x18] sm:$0xff]  ;;  %s2634_s8 = sld [smem:[#allocation26_spill]] }
  0x80   : > { %992 = vmatpush.bf16.msra.mxu1 %v1718_v32  ;;  %1732 = vmatpush.bf16.msra.mxu2 %v1718_v32  ;;  %v1722_v34 = vld [vmem:[#allocation12 + $0x8] sm:$0xff]  ;;  %v1897_v36 = vld [vmem:[%s2594_s5] ss:$0 sm:$0xff]  ;;  %s1273_s10 = sld [smem:[#allocation5]] }
  0x81   : > { %v2464_v12 = vadd.s32 %v854_v10, %v852_v11  ;;  %v853_v13 = vadd.s32 8, %v852_v11  ;;  %v1721_v54 = vld [vmem:[#allocation12] sm:$0xff]  ;;  %v884_v59 = vld [vmem:[%s2460_s20 + $0x8] sm:$0xff]  ;;  %s1704_s24 = sld [smem:[#allocation5 + $0x1]] }
  0x82   : > { %v883_v56 = vld [vmem:[%s2460_s20] sm:$0xff]  ;;  %v882_v60 = vld [vmem:[%s2455_s12 + $0x8] sm:$0xff]  ;;  %s2638_s29 = sld [smem:[#allocation29_spill]] }
  0x83   : > { %vm857_vm2 = vcmp.lt.s32.totalorder %v2464_v12, 24  ;;  %v2467_v14 = vadd.s32 %v854_v10, %v853_v13  ;;  %vm859_vm4 = vcmp.lt.s32.totalorder %v2464_v12, 16  ;;  %v881_v57 = vld [vmem:[%s2455_s12] sm:$0xff]  ;;  %v1719_v10 = vld [vmem:[#allocation10] sm:$0xff]  ;;  %s2635_s12 = sld [smem:[#allocation28_spill]] }
  0x84   : > { %v865_v15 = vsel %vm857_vm2, 1, %v2195_v9  ;;  %v887_v18 = vsel %vm859_vm4, 1, %v2195_v9  ;;  %993 = vmatpush.bf16.msra.mxu1 %v1717_v33  ;;  %1733 = vmatpush.bf16.msra.mxu2 %v1717_v33  ;;  %v1898_v13 = vld [vmem:[%s2633_s0] ss:$0 sm:$0xff]  ;;  %v1726_v32 = vld [vmem:[#allocation13 + $0x18] sm:$0xff]  ;;  %s2645_s15 = sld [smem:[#allocation30_spill]] (!%p1707_p10) }
  0x85   : > { %868 = vperm.xlu0 %1895, %v865_v15   ;;  %vm858_vm3 = vcmp.lt.s32.totalorder %v2467_v14, 24  ;;  %890 = vperm.xlu1 %1896, %v887_v18   ;;  %vm860_vm8 = vcmp.lt.s32.totalorder %v2467_v14, 16  ;;  %v1725_v33 = vld [vmem:[#allocation13 + $0x10] sm:$0xff]  ;;  %s2646_s28 = sld [smem:[#allocation31_spill]] (!%p1707_p10) }
  0x86   : > { %v866_v16 = vsel %vm858_vm3, 1, %v2195_v9  ;;  %v888_v31 = vsel %vm860_vm8, 1, %v2195_v9  ;;  %v1720_v9 = vld [vmem:[#allocation10 + $0x8] sm:$0xff]  ;;  %1170 = vmatpush.bf16.msrb.mxu0 %v1726_v32 }
  0x87   : > { %1088 = vmatpush.bf16.msrb.mxu3 %v1720_v9 }
  0x88   : > { %1051 = vmatpush.bf16.msrb.mxu2 %v1722_v34  ;;  %v1724_v34 = vld [vmem:[#allocation13 + $0x8] sm:$0xff] }
  0x8a   : > { %1171 = vmatpush.bf16.msrb.mxu0 %v1725_v33 }
  0x8b   : > { %1089 = vmatpush.bf16.msrb.mxu3 %v1719_v10 }
  0x8c   : > { %1052 = vmatpush.bf16.msrb.mxu2 %v1721_v54 }
  0x8d   : > { %871 = vperm.xlu0 %1895, %v866_v16   ;;  %893 = vperm.xlu1 %1896, %v888_v31  }
  0x8e   : > { %1172 = vmatpush.bf16.msrb.mxu0 %v1724_v34 }
  0xf7   : > { %v869_v19 = vpop.permute.xlu0 %868  ;;  %v891_v55 = vpop.permute.xlu1 %890 }
  0xf8   : > { %vm873_vm5 = vcmp.eq.s32.totalorder %v869_v19, 1  ;;  %vm895_vm14 = vcmp.eq.s32.totalorder %v891_v55, 1 }
  0xf9   : > { %v875_v25 = vsel %vm873_vm5, %v861_v20, 0.0  ;;  %v877_v26 = vsel %vm873_vm5, %v863_v21, 0.0  ;;  %v897_v58 = vsel %vm895_vm14, %v883_v56, 0.0  ;;  %v899_v4 = vsel %vm895_vm14, %v885_v2, 0.0  ;;  %v1727_v2 = vld [vmem:[#allocation15] sm:$0xff] }
  0xfa   : > { %v901_v62 = vadd.f32 %v897_v58, %v881_v57  ;;  %v903_v6 = vadd.f32 %v899_v4, %v881_v57  ;;  %v1900_v4 = vld [vmem:[%s2635_s12] ss:$0 sm:$0xff] }
  0xff   : > { %v872_v24 = vpop.permute.xlu0 %871  ;;  %v894_v61 = vpop.permute.xlu1 %893 }
 0x100   : > { %vm874_vm6 = vcmp.eq.s32.totalorder %v872_v24, 1  ;;  %vm896_vm15 = vcmp.eq.s32.totalorder %v894_v61, 1 }
 0x101   : > { %v876_v27 = vsel %vm874_vm6, %v862_v22, 0.0  ;;  %v878_v28 = vsel %vm874_vm6, %v864_v23, 0.0  ;;  %v898_v63 = vsel %vm896_vm15, %v884_v59, 0.0  ;;  %v900_v5 = vsel %vm896_vm15, %v886_v3, 0.0 }
 0x102   : > { %v879_v29 = vpack.c.bf16 %v876_v27, %v875_v25  ;;  %v880_v30 = vpack.c.bf16 %v878_v28, %v877_v26  ;;  %v902_v0 = vadd.f32 %v898_v63, %v882_v60  ;;  %v904_v7 = vadd.f32 %v900_v5, %v882_v60  ;;  %v1730_v63 = vld [vmem:[#allocation15 + $0x18] sm:$0xff] }
 0x103   : > { %vm1159_vm6 = vcmask 523264   ;;  %1245 = vmatpush.bf16.msrb.mxu1 %v1730_v63 }
 0x104   : > { %1634 = vmatmul.msk.bf16.vlgmr.msra.gmra.mxu0 %vm919_vm7, %v879_v29  ;;  %1635 = vmatmul.msk.bf16.vlgmr.msra.gmra.mxu3 %vm919_vm7, %v880_v30  ;;  %v905_v1 = vpack.c.bf16 %v902_v0, %v901_v62  ;;  %v906_v8 = vpack.c.bf16 %v904_v7, %v903_v6  ;;  %v1729_v0 = vld [vmem:[#allocation15 + $0x10] sm:$0xff] }
 0x107   : > { %1246 = vmatpush.bf16.msrb.mxu1 %v1729_v0 }
 0x181   : > { %v935_v35 = vpop.f32.mrf.mxu0 }
 0x182   : > { %v936_v37 = vadd.f32 %v1897_v36, %v935_v35  ;;  %v1723_v35 = vld [vmem:[#allocation13] sm:$0xff] }
 0x183   : > { %1173 = vmatpush.bf16.msrb.mxu0 %v1723_v35 }
 0x184   : > { %v949_v40 = vmul.f32 0.1, %v936_v37  ;;  %vm945_vm9 = vcmp.gt.f32.partialorder %v936_v37, 0.0 }
 0x186   : > { %v953_v44 = vsel %vm945_vm9, %v936_v37, %v949_v40 }
 0x187   : > { %v940_v38 = vpop.f32.mrf.mxu3 }
 0x188   : > { %v941_v42 = vadd.f32 %v1897_v36, %v940_v38 }
 0x189   : > { %v937_v39 = vpop.f32.mrf.mxu0 }
 0x18a   : > { %v938_v41 = vadd.f32 %v1897_v36, %v937_v39  ;;  %v951_v48 = vmul.f32 0.1, %v941_v42  ;;  %vm947_vm12 = vcmp.gt.f32.partialorder %v941_v42, 0.0  ;;  %v1899_v39 = vld [vmem:[%s2634_s8] ss:$0 sm:$0xff] }
 0x18c   : > { %vm946_vm10 = vcmp.gt.f32.partialorder %v938_v41, 0.0  ;;  %v950_v43 = vmul.f32 0.1, %v938_v41  ;;  %v955_v51 = vsel %vm947_vm12, %v941_v42, %v951_v48 }
 0x18e   : > { %v954_v45 = vsel %vm946_vm10, %v938_v41, %v950_v43 }
 0x18f   : > { %v942_v46 = vpop.f32.mrf.mxu3  ;;  %v957_v47 = vpack.c.bf16 %v954_v45, %v953_v44 }
 0x190   : > { %v943_v49 = vadd.f32 %v1897_v36, %v942_v46 }
 0x191   : > { %1644 = vmatmul.msk.bf16.vlgmr.msra.gmra.mxu1 %vm979_vm11, %v957_v47 }
 0x192   : > { %vm948_vm13 = vcmp.gt.f32.partialorder %v943_v49, 0.0  ;;  %v952_v50 = vmul.f32 0.1, %v943_v49 }
 0x194   : > { %v956_v52 = vsel %vm948_vm13, %v943_v49, %v952_v50 }
 0x195   : > { %v958_v53 = vpack.c.bf16 %v956_v52, %v955_v51 }
 0x197   : > { %1645 = vmatmul.msk.bf16.vlgmr.msra.gmra.mxu2 %vm979_vm11, %v958_v53 }
 0x1a7   : > { %1654 = vmatmul.msk.bf16.vlgmr.msrb.gmra.mxu2 %vm979_vm11, %v905_v1  ;;  %v1728_v1 = vld [vmem:[#allocation15 + $0x8] sm:$0xff] }
 0x1a8   : > { %1247 = vmatpush.bf16.msrb.mxu1 %v1728_v1 }
 0x1ac   : > { %1248 = vmatpush.bf16.msrb.mxu1 %v1727_v2 }
 0x1b7   : > { %1655 = vmatmul.msk.bf16.gmra.mxu2 %vm979_vm11, %v906_v8 }
 0x20e   : > { %v995_v11 = vpop.f32.mrf.mxu1 }
 0x20f   : > { %v996_v15 = vadd.f32 %v1898_v13, %v995_v11 }
 0x211   : > { %v1009_v17 = vmul.f32 0.1, %v996_v15  ;;  %vm1005_vm0 = vcmp.gt.f32.partialorder %v996_v15, 0.0 }
 0x213   : > { %v1013_v21 = vsel %vm1005_vm0, %v996_v15, %v1009_v17 }
 0x216   : > { %v997_v16 = vpop.f32.mrf.mxu1 }
 0x217   : > { %v998_v18 = vadd.f32 %v1898_v13, %v997_v16 }
 0x219   : > { %vm1006_vm1 = vcmp.gt.f32.partialorder %v998_v18, 0.0  ;;  %v1010_v19 = vmul.f32 0.1, %v998_v18 }
 0x21a   : > { %v1000_v20 = vpop.f32.mrf.mxu2 }
 0x21b   : > { %v1014_v22 = vsel %vm1006_vm1, %v998_v18, %v1010_v19  ;;  %v1001_v25 = vadd.f32 %v1898_v13, %v1000_v20 }
 0x21c   : > { %v1017_v23 = vpack.c.bf16 %v1014_v22, %v1013_v21 }
 0x21d   : > { %v1011_v28 = vmul.f32 0.1, %v1001_v25  ;;  %vm1007_vm3 = vcmp.gt.f32.partialorder %v1001_v25, 0.0 }
 0x21e   : > { %1664 = vmatmul.msk.bf16.vlgmr.msrb.gmra.mxu3 %vm979_vm11, %v1017_v23 }
 0x21f   : > { %v1015_v30 = vsel %vm1007_vm3, %v1001_v25, %v1011_v28  ;;  %v1311_v25 = vstv %s1704_s24  ;;  %v2196_v28 = vmov 0.0   ;;  %vm1307_vm3 = vcmask 0  }
 0x220   : > { %vm2521_vm14 = vcmp.lt.s32.totalorder %v2467_v14, %v1311_v25  ;;  %vm2531_vm0 = vcmp.lt.s32.totalorder %v2464_v12, %v1311_v25 }
 0x221   : > { %v1705_v34 = vsel %vm2531_vm0, 1.0, %v2196_v28  ;;  %v1706_v35 = vsel %vm2521_vm14, 1.0, %v2196_v28 }
 0x222   : > { %v1002_v24 = vpop.f32.mrf.mxu2 }
 0x223   : > { %v1003_v26 = vadd.f32 %v1898_v13, %v1002_v24  ;;  %v1274_v24 = vstv %s1273_s10 }
 0x224   : > { %vm2511_vm13 = vcmp.lt.s32.totalorder %v2464_v12, %v1274_v24  ;;  %vm2526_vm15 = vcmp.lt.s32.totalorder %v2467_v14, %v1274_v24  ;;  %v1335_v14 = vadd.f32 %v1706_v35, %v1705_v34 }
 0x225   : > { %v1012_v27 = vmul.f32 0.1, %v1003_v26  ;;  %vm1008_vm2 = vcmp.gt.f32.partialorder %v1003_v26, 0.0  ;;  %v1703_v33 = vsel %vm2526_vm15, 1.0, %v2196_v28 }
 0x227   : > { %v1016_v29 = vsel %vm1008_vm2, %v1003_v26, %v1012_v27  ;;  %v1901_v27 = vld [vmem:[%s2638_s29] ss:$0 sm:$0xff] }
 0x228   : > { %v1018_v31 = vpack.c.bf16 %v1016_v29, %v1015_v30  ;;  %v1702_v29 = vsel %vm2511_vm13, 1.0, %v2196_v28 }
 0x22a   : > { %v1054_v36 = vpop.f32.mrf.mxu2 }
 0x22e   : > { %1665 = vmatmul.msk.bf16.gmra.mxu3 %vm979_vm11, %v1018_v31 }
 0x232   : > { %v1056_v40 = vpop.f32.mrf.mxu2 }
 0x23a   : > { %v1059_v47 = vpop.f32.mrf.mxu2 }
 0x242   : > { %v1061_v54 = vpop.f32.mrf.mxu2 }
 0x2a1   : > { %v1091_v37 = vpop.f32.mrf.mxu3 }
 0x2a2   : > { %v1092_v38 = vadd.f32 %v1091_v37, %v1054_v36  ;;  %v1299_v37 = vadd.f32 %v1703_v33, %v1702_v29  ;;  %v1314_v29 = vld [vmem:[#allocation2 + $0x1] sm:$0x1] }
 0x2a4   : > { %v1105_v41 = vadd.f32 %v1899_v39, %v1092_v38 }
 0x2a6   : > { %v1113_v44 = vmul.f32 0.1, %v1105_v41  ;;  %vm1109_vm4 = vcmp.gt.f32.partialorder %v1105_v41, 0.0 }
 0x2a8   : > { %v1117_v48 = vsel %vm1109_vm4, %v1105_v41, %v1113_v44 }
 0x2a9   : > { %v1093_v42 = vpop.f32.mrf.mxu3 }
 0x2aa   : > { %v1094_v43 = vadd.f32 %v1093_v42, %v1056_v40  ;;  %v1336_v40 = vrot.slane %v1335_v14, 4 }
 0x2ac   : > { %v1106_v45 = vadd.f32 %v1899_v39, %v1094_v43  ;;  %v1337_v12 = vadd.f32 %v1336_v40, %v1335_v14 }
 0x2ae   : > { %vm1110_vm5 = vcmp.gt.f32.partialorder %v1106_v45, 0.0  ;;  %v1114_v46 = vmul.f32 0.1, %v1106_v45  ;;  %v1338_v44 = vrot.slane %v1337_v12, 2 }
 0x2b0   : > { %v1118_v49 = vsel %vm1110_vm5, %v1106_v45, %v1114_v46 }
 0x2b1   : > { %v1096_v50 = vpop.f32.mrf.mxu3  ;;  %v1121_v51 = vpack.c.bf16 %v1118_v49, %v1117_v48 }
 0x2b2   : > { %v1097_v52 = vadd.f32 %v1096_v50, %v1059_v47  ;;  %v1339_v47 = vadd.f32 %v1338_v44, %v1337_v12 }
 0x2b3   : > { %1682 = vmatmul.msk.bf16.vlgmr.msrb.gmra.mxu0 %vm1159_vm6, %v1121_v51 }
 0x2b4   : > { %v1107_v53 = vadd.f32 %v1899_v39, %v1097_v52  ;;  %v1340_v51 = vrot.slane %v1339_v47, 1 }
 0x2b6   : > { %v1115_v57 = vmul.f32 0.1, %v1107_v53  ;;  %vm1111_vm7 = vcmp.gt.f32.partialorder %v1107_v53, 0.0 }
 0x2b8   : > { %v1119_v60 = vsel %vm1111_vm7, %v1107_v53, %v1115_v57  ;;  %v1296_v53 = vld [vmem:[#allocation3] sm:$0x1]  ;;  %vm1294_vm7 = vcmask 516096  }
 0x2b9   : > { %v1098_v55 = vpop.f32.mrf.mxu3 }
 0x2ba   : > { %v1099_v56 = vadd.f32 %v1098_v55, %v1061_v54 }
 0x2bc   : > { %v1108_v58 = vadd.f32 %v1899_v39, %v1099_v56  ;;  %v1300_v39 = vrot.slane %v1299_v37, 4  ;;  %v1341_v56 = vadd.f32 %v1340_v51, %v1339_v47 }
 0x2be   : > { %vm1112_vm8 = vcmp.gt.f32.partialorder %v1108_v58, 0.0  ;;  %v1116_v59 = vmul.f32 0.1, %v1108_v58  ;;  %v1301_v41 = vadd.f32 %v1300_v39, %v1299_v37 }
 0x2c0   : > { %v1120_v61 = vsel %vm1112_vm8, %v1108_v58, %v1116_v59  ;;  %v1302_v43 = vrot.slane %v1301_v41, 2  ;;  %v1332_v58 = vld [vmem:[#allocation3 + $0x1] sm:$0x1] }
 0x2c1   : > { %v1122_v62 = vpack.c.bf16 %v1120_v61, %v1119_v60  ;;  %v1342_v61 = vadd.f32 %v1341_v56, %v1332_v58 }
 0x2c2   : > { %v1303_v46 = vadd.f32 %v1302_v43, %v1301_v41 }
 0x2c3   : > { %1683 = vmatmul.msk.bf16.gmra.mxu0 %vm1159_vm6, %v1122_v62  ;;  %1343 = vst.msk [vmem:[#allocation3 + $0x1] sm:$0x1] %vm1307_vm3, %v1342_v61 }
 0x2c4   : > { %v1304_v50 = vrot.slane %v1303_v46, 1 }
 0x2c6   : > { %v1305_v55 = vadd.f32 %v1304_v50, %v1303_v46 }
 0x2c8   : > { %v1306_v60 = vadd.f32 %v1305_v55, %v1296_v53 }
 0x2ca   : > { %1308 = vst.msk [vmem:[#allocation3] sm:$0x1] %vm1307_vm3, %v1306_v60 }
 0x330   : > { %v1175_v3 = vpop.f32.mrf.mxu0 }
 0x331   : > { %v1176_v5 = vadd.f32 %v1900_v4, %v1175_v3 }
 0x333   : > { %v1189_v7 = vmul.f32 0.1, %v1176_v5  ;;  %vm1185_vm9 = vcmp.gt.f32.partialorder %v1176_v5, 0.0 }
 0x335   : > { %v1193_v10 = vsel %vm1185_vm9, %v1176_v5, %v1189_v7 }
 0x338   : > { %v1177_v6 = vpop.f32.mrf.mxu0 }
 0x339   : > { %v1178_v8 = vadd.f32 %v1900_v4, %v1177_v6 }
 0x33b   : > { %vm1186_vm10 = vcmp.gt.f32.partialorder %v1178_v8, 0.0  ;;  %v1190_v9 = vmul.f32 0.1, %v1178_v8 }
 0x33d   : > { %v1194_v11 = vsel %vm1186_vm10, %v1178_v8, %v1190_v9 }
 0x33e   : > { %v1197_v13 = vpack.c.bf16 %v1194_v11, %v1193_v10 }
 0x340   : > { %v1180_v15 = vpop.f32.mrf.mxu0  ;;  %1700 = vmatmul.msk.bf16.vlgmr.msrb.gmra.mxu1 %vm1159_vm6, %v1197_v13  ;;  %v1277_v13 = vld [vmem:[#allocation2] sm:$0x1] }
 0x341   : > { %v1181_v16 = vadd.f32 %v1900_v4, %v1180_v15 }
 0x343   : > { %v1191_v18 = vmul.f32 0.1, %v1181_v16  ;;  %vm1187_vm11 = vcmp.gt.f32.partialorder %v1181_v16, 0.0 }
 0x345   : > { %v1195_v21 = vsel %vm1187_vm11, %v1181_v16, %v1191_v18 }
 0x348   : > { %v1182_v17 = vpop.f32.mrf.mxu0 }
 0x349   : > { %v1183_v19 = vadd.f32 %v1900_v4, %v1182_v17 }
 0x34b   : > { %vm1188_vm12 = vcmp.gt.f32.partialorder %v1183_v19, 0.0  ;;  %v1192_v20 = vmul.f32 0.1, %v1183_v19 }
 0x34d   : > { %v1196_v22 = vsel %vm1188_vm12, %v1183_v19, %v1192_v20 }
 0x34e   : > { %v1198_v23 = vpack.c.bf16 %v1196_v22, %v1195_v21 }
 0x350   : > { %1701 = vmatmul.msk.bf16.gmra.mxu1 %vm1159_vm6, %v1198_v23 }
 0x3bd   : > { %v1250_v36 = vpop.f32.mrf.mxu1 }
 0x3be   : > { %v1251_v38 = vadd.f32 %v1901_v27, %v1250_v36 }
 0x3c0   : > { %v1264_v42 = vmul.f32 0.1, %v1251_v38  ;;  %vm1260_vm1 = vcmp.gt.f32.partialorder %v1251_v38, 0.0 }
 0x3c2   : > { %v1268_v48 = vsel %vm1260_vm1, %v1251_v38, %v1264_v42 }
 0x3c3   : > { %v1282_v54 = vsel %vm2511_vm13, %v1268_v48, 0.0 }
 0x3c4   : > { %v1284_v62 = vsel %vm1159_vm6, %v1282_v54, 0.0 }
 0x3c5   : > { %v1252_v45 = vpop.f32.mrf.mxu1 }
 0x3c6   : > { %v1253_v49 = vadd.f32 %v1901_v27, %v1252_v45 }
 0x3c8   : > { %vm1261_vm2 = vcmp.gt.f32.partialorder %v1253_v49, 0.0  ;;  %v1265_v52 = vmul.f32 0.1, %v1253_v49 }
 0x3ca   : > { %v1269_v57 = vsel %vm1261_vm2, %v1253_v49, %v1265_v52 }
 0x3cb   : > { %v1283_v59 = vsel %vm2526_vm15, %v1269_v57, 0.0 }
 0x3cc   : > { %v1285_v63 = vsel %vm1159_vm6, %v1283_v59, 0.0 }
 0x3cd   : > { %v1286_v0 = vadd.f32 %v1285_v63, %v1284_v62  ;;  %v1255_v1 = vpop.f32.mrf.mxu1 }
 0x3ce   : > { %v1256_v2 = vadd.f32 %v1901_v27, %v1255_v1 }
 0x3cf   : > { %v1287_v3 = vrot.slane %v1286_v0, 4 }
 0x3d0   : > { %v1266_v5 = vmul.f32 0.1, %v1256_v2  ;;  %vm1262_vm4 = vcmp.gt.f32.partialorder %v1256_v2, 0.0 }
 0x3d1   : > { %v1288_v4 = vadd.f32 %v1287_v3, %v1286_v0 }
 0x3d2   : > { %v1270_v9 = vsel %vm1262_vm4, %v1256_v2, %v1266_v5 }
 0x3d3   : > { %v1289_v6 = vrot.slane %v1288_v4, 2  ;;  %v1319_v17 = vsel %vm2531_vm0, %v1270_v9, 0.0 }
 0x3d4   : > { %v1321_v21 = vsel %vm1159_vm6, %v1319_v17, 0.0 }
 0x3d5   : > { %v1290_v7 = vadd.f32 %v1289_v6, %v1288_v4  ;;  %v1257_v8 = vpop.f32.mrf.mxu1 }
 0x3d6   : > { %v1258_v10 = vadd.f32 %v1901_v27, %v1257_v8 }
 0x3d7   : > { %v1291_v11 = vrot.slane %v1290_v7, 1 }
 0x3d8   : > { %vm1263_vm5 = vcmp.gt.f32.partialorder %v1258_v10, 0.0  ;;  %v1267_v15 = vmul.f32 0.1, %v1258_v10 }
 0x3d9   : > { %v1292_v16 = vadd.f32 %v1291_v11, %v1290_v7 }
 0x3da   : > { %v1271_v18 = vsel %vm1263_vm5, %v1258_v10, %v1267_v15 }
 0x3db   : > { %v1293_v19 = vadd.f32 %v1292_v16, %v1277_v13  ;;  %v1320_v20 = vsel %vm2521_vm14, %v1271_v18, 0.0 }
 0x3dc   : > { %v1322_v22 = vsel %vm1159_vm6, %v1320_v20, 0.0 }
 0x3dd   : > { %1295 = vst.msk [vmem:[#allocation2] sm:$0x1] %vm1294_vm7, %v1293_v19  ;;  %v1323_v23 = vadd.f32 %v1322_v22, %v1321_v21 }
 0x3df   : > { %v1324_v24 = vrot.slane %v1323_v23, 4 }
 0x3e1   : > { %v1325_v25 = vadd.f32 %v1324_v24, %v1323_v23 }
 0x3e3   : > { %v1326_v26 = vrot.slane %v1325_v25, 2 }
 0x3e5   : > { %v1327_v27 = vadd.f32 %v1326_v26, %v1325_v25 }
 0x3e7   : > { %v1328_v28 = vrot.slane %v1327_v27, 1 }
 0x3e9   : > { %v1329_v31 = vadd.f32 %v1328_v28, %v1327_v27  ;;  %1347 = sbr.rel (%p1707_p10) target bundleno = 1140 (0x474), region = 164 }
 0x3eb   : > { %v1330_v32 = vadd.f32 %v1329_v31, %v1314_v29 }
 0x3ed   : > { %1331 = vst.msk [vmem:[#allocation2 + $0x1] sm:$0x1] %vm1294_vm7, %v1330_v32 }
 0x3ee   : > { %v1348_v30 = vld [vmem:[#allocation2] sm:$0x1]  ;;  %v1349_v39 = vld [vmem:[#allocation3] sm:$0x1]  ;;  %v1375_v40 = vld [vmem:[#allocation3 + $0x1] sm:$0x1] }
 0x3ef   : > { %v1350_v33 = vld [vmem:[%s2645_s15] sm:$0x1]  ;;  %1902 = vrcp.f32 %v1349_v39  ;;  %vm1363_vm6 = vweird.f32 %v1349_v39  ;;  %v1369_v46 = vand.u32 2147483648, %v1349_v39  ;;  %v1367_v48 = vand.u32 2147483647, %v1349_v39 }
 0x3f0   : > { %v1351_v34 = vmul.f32 %v1350_v33, %v1348_v30  ;;  %v1376_v36 = vld [vmem:[%s2645_s15] sm:$0x1]  ;;  %1904 = vrcp.f32 %v1375_v40  ;;  %v1355_v50 = vld [vmem:[#allocation6] sm:$0x1]  ;;  %vm1389_vm11 = vweird.f32 %v1375_v40  ;;  %v1395_v57 = vand.u32 2147483648, %v1375_v40 }
 0x3f1   : > { %v1370_v51 = vor.u32 1.1754944e-38, %v1369_v46  ;;  %v1356_v52 = vmul.f32 %v1355_v50, %v1349_v39  ;;  %vm1368_vm10 = vcmp.eq.f32.partialorder %v1367_v48, 8.507059e+37  ;;  %v1393_v60 = vand.u32 2147483647, %v1375_v40  ;;  %v1381_v61 = vld [vmem:[#allocation6] sm:$0x1] }
 0x3f2   : > { %v1352_v37 = vsel %vm1294_vm7, %v1351_v34, 0.0  ;;  %v1396_v63 = vor.u32 1.1754944e-38, %v1395_v57  ;;  %v1382_v0 = vmul.f32 %v1381_v61, %v1375_v40 }
 0x3f3   : > { %1353 = vadd.xlane.f32.xlu0 %v1352_v37  ;;  %vm1394_vm14 = vcmp.eq.f32.partialorder %v1393_v60, 8.507059e+37 }
 0x3f4   : > { %v1374_v35 = vld [vmem:[#allocation2 + $0x1] sm:$0x1] }
 0x3f5   : > { %v1377_v14 = vmul.f32 %v1376_v36, %v1374_v35  ;;  %v1903_v41 = vpop.eup %1902 }
 0x3f6   : > { %v1359_v12 = vmul.f32 %v1903_v41, %v1349_v39  ;;  %v1905_v43 = vpop.eup %1904  ;;  %vm1364_vm8 = vweird.f32 %v1903_v41 }
 0x3f7   : > { %v1378_v38 = vsel %vm1294_vm7, %v1377_v14, 0.0  ;;  %v1385_v45 = vmul.f32 %v1905_v43, %v1375_v40  ;;  %vm1365_vm9 = vmor %vm1363_vm6, %vm1364_vm8  ;;  %vm1390_vm12 = vweird.f32 %v1905_v43 }
 0x3f8   : > { %v1360_v42 = vsub.f32 1.0, %v1359_v12  ;;  %vm1391_vm13 = vmor %vm1389_vm11, %vm1390_vm12 }
 0x3f9   : > { %v1386_v49 = vsub.f32 1.0, %v1385_v45 }
 0x3fa   : > { %v1361_v44 = vmul.f32 %v1903_v41, %v1360_v42 }
 0x3fb   : > { %1379 = vadd.xlane.f32.xlu0 %v1378_v38  ;;  %v1387_v54 = vmul.f32 %v1905_v43, %v1386_v49 }
 0x3fc   : > { %v1362_v47 = vadd.f32 %v1903_v41, %v1361_v44 }
 0x3fd   : > { %v1388_v59 = vadd.f32 %v1905_v43, %v1387_v54 }
 0x3fe   : > { %v1366_v53 = vsel %vm1365_vm9, %v1903_v41, %v1362_v47 }
 0x3ff   : > { %v1371_v55 = vsel %vm1368_vm10, %v1370_v51, %v1366_v53  ;;  %v1392_v1 = vsel %vm1391_vm13, %v1905_v43, %v1388_v59 }
 0x400   : > { %v1397_v2 = vsel %vm1394_vm14, %v1396_v63, %v1392_v1 }
 0x466   : > { %v1354_v56 = vpop.xlane.xlu0 %1353 }
 0x467   : > { %v1357_v58 = vadd.f32 %v1356_v52, %v1354_v56 }
 0x469   : > { %v1372_v62 = vmul.f32 %v1371_v55, %v1357_v58 }
 0x46b   : > { %1373 = vst.msk [vmem:[%s2646_s28] sm:$0x1] %vm1307_vm3, %v1372_v62 }
 0x46e   : > { %v1380_v3 = vpop.xlane.xlu0 %1379 }
 0x46f   : > { %v1383_v4 = vadd.f32 %v1382_v0, %v1380_v3 }
 0x471   : > { %v1398_v5 = vmul.f32 %v1397_v2, %v1383_v4 }
 0x473   : > { %1708 = vst.msk [vmem:[%s2646_s28 + $0x1] sm:$0x1] %vm1307_vm3, %v1398_v5 }
 0x474 PF: > { %s40_s1 = sadd.s32 1, %s2152_s1   ;;  %s2647_s23 = sld [smem:[#allocation21_spill]] }
 0x475   : > { %p37_p11 = scmp.ge.s32.totalorder %s40_s1, 4   ;;  %s2648_s14 = sld [smem:[#allocation20_spill]] }
 0x476   : > { %s2649_s0 = smov %s2140_s30  ;;  %s2651_s18 = smov %s2148_s19 }
 0x477   :  { %39 = sbr.rel (!%p37_p11) target bundleno = 27 (0x1b), region = 237 }
 0x47a   : > { %s2650_s30 = smov %s2647_s23 }
 0x47b   : > { %s2652_s19 = smov %s2648_s14 }
 0x47c   :  { %1421 = vsyncpa [#allocation9], 1 }
 0x47d   :  { %1423 = vsyncpa [#allocation9 + $0x1], 1 }
 0x47e   :  { %1424 = vsyncpa [#allocation11], 1 }
 0x47f   :  { %1425 = vsyncpa [#allocation14], 1 }

</bundles_post_ra>
